<compile_context>
chip_gen: v7x
topology: tpu7x:2x2x1
jax: 0.10.0
libtpu: 0.0.40
codegen_flags: <defaults>
</compile_context>

<pallas_src>
import jax
import jax.numpy as jnp
from jax.experimental import pallas as pl
from jax.experimental.pallas import tpu as pltpu

BETA = 0.5          # self.beta in PROST_NN_sparse
_EPS = 1e-8
_LANE = 128


def _round_up(x, m):
    return -(-x // m) * m


def _choose_tiles(n):
    """(row tile tm, reduction tile tk, padded node count)."""
    if n <= 1024:
        n_pad = _round_up(n, _LANE)          # lane-dense A tiles even when small
        return n_pad, n_pad, n_pad
    tm = 512
    tk = min(2048, _round_up(n, 512))
    n_pad = _round_up(n, tk)                 # tm (512) divides tk, so divides n_pad
    return tm, tk, n_pad


def _pad2(x, rows, cols):
    return jnp.pad(x, ((0, rows - x.shape[0]), (0, cols - x.shape[1])))


def _vmem_capacity():
    """Generation-aware VMEM capacity; conservative fallback (v7x = 64 MiB)."""
    try:
        cap = int(getattr(pltpu.get_tpu_info(), "vmem_capacity_bytes", 0))
        return cap if cap > 0 else (64 << 20)
    except Exception:  # pragma: no cover - defensive
        return 64 << 20


# ----------------------------- Pallas kernels ------------------------------

def xw_kernel(x_ref, w_ref, d_ref, o_ref):
    """Feature transform (x @ W), rows pre-scaled by D^-1/2 (folded norm)."""
    xw = jnp.dot(x_ref[...], w_ref[...], preferred_element_type=jnp.float32)
    o_ref[...] = (xw * d_ref[...]).astype(o_ref.dtype)


def _accumulate_block(i, k, blk_ref, cnt_ref, a_ref, xw_ref, acc_ref, *,
                      xw_resident, tk):
    """acc += A_tile(0/1 int8) @ XW_tile; skipped for padded (all-zero) blocks."""
    @pl.when(k == 0)
    def _():
        acc_ref[...] = jnp.zeros_like(acc_ref)

    @pl.when(k < cnt_ref[i])
    def _():
        if xw_resident:
            off = pl.multiple_of(blk_ref[i, k] * tk, tk)
            xw = xw_ref[pl.ds(off, tk), :]
        else:
            xw = xw_ref[...]
        acc_ref[...] += jnp.dot(a_ref[...].astype(jnp.bfloat16), xw,
                                preferred_element_type=jnp.float32)


def make_layer1_kernel(*, xw_resident, tk):
    """Layer 1 fused with the layer-2 feature transform:
       xw2 = D^-1/2 * PReLU1(D^-1/2 * (A @ XW1_scaled) + b1) @ W2."""
    def kernel(blk_ref, cnt_ref, a_ref, xw_ref, d_ref, b_ref, alpha_ref,
               w2_ref, xw2_ref, acc_ref):
        i = pl.program_id(0)
        k = pl.program_id(1)
        _accumulate_block(i, k, blk_ref, cnt_ref, a_ref, xw_ref, acc_ref,
                          xw_resident=xw_resident, tk=tk)

        @pl.when(k == pl.num_programs(1) - 1)
        def _():
            h = acc_ref[...] * d_ref[...] + b_ref[...]           # f32
            h = jnp.where(h > 0.0, h, alpha_ref[...] * h)        # PReLU1
            hw = (h * d_ref[...]).astype(jnp.bfloat16)           # fold next norm
            xw2_ref[...] = jnp.dot(
                hw, w2_ref[...],
                preferred_element_type=jnp.float32).astype(xw2_ref.dtype)
    return kernel


def make_layer2_q_kernel(*, xw_resident, tk):
    """Layer 2 fused with PROST_NN_sparse.get_q on the resident z tile."""
    def kernel(blk_ref, cnt_ref, a_ref, xw_ref, d_ref, b_ref, alpha_ref,
               mu_t_ref, mu_sq_ref, kmask_ref, z_ref, q_ref, acc_ref):
        i = pl.program_id(0)
        k = pl.program_id(1)
        _accumulate_block(i, k, blk_ref, cnt_ref, a_ref, xw_ref, acc_ref,
                          xw_resident=xw_resident, tk=tk)

        @pl.when(k == pl.num_programs(1) - 1)
        def _():
            h = acc_ref[...] * d_ref[...] + b_ref[...]
            z = jnp.where(h > 0.0, h, alpha_ref[...] * h)        # PReLU2, f32
            z_ref[...] = z.astype(z_ref.dtype)

            # ||z_i - mu_k||^2 = ||z_i||^2 + ||mu_k||^2 - 2 z_i.mu_k (MXU cross
            # term), clamped at 0 against fp cancellation.
            z_sq = jnp.sum(z * z, axis=1, keepdims=True)         # (tm, 1)
            cross = jnp.dot(z, mu_t_ref[...],
                            preferred_element_type=jnp.float32)  # (tm, Kp)
            d2 = jnp.maximum(z_sq + mu_sq_ref[...] - 2.0 * cross, 0.0)

            q = pl.reciprocal(1.0 + d2 * (1.0 / BETA) + _EPS, approx=True)
            if BETA == 0.5:
                q = q * jnp.sqrt(q) * 0.5        # q^(beta+1)/2 with beta=0.5
            else:
                q = jnp.power(q, BETA + 1.0) * 0.5
            q = q * kmask_ref[...]               # drop padded clusters
            q = q / jnp.sum(q, axis=1, keepdims=True)   # exact row normalize
            q_ref[...] = q.astype(q_ref.dtype)
    return kernel


# ------------------------------ JAX wrappers -------------------------------

def _xw_call(x_p, w_p, d_row, *, tm, vmem_limit):
    n_pad, c_in_p = x_p.shape
    c_out_p = w_p.shape[1]
    return pl.pallas_call(
        xw_kernel,
        out_shape=jax.ShapeDtypeStruct((n_pad, c_out_p), jnp.bfloat16),
        grid=(n_pad // tm,),
        in_specs=[pl.BlockSpec((tm, c_in_p), lambda i: (i, 0)),
                  pl.BlockSpec((c_in_p, c_out_p), lambda i: (0, 0)),
                  pl.BlockSpec((tm, 1), lambda i: (i, 0))],
        out_specs=pl.BlockSpec((tm, c_out_p), lambda i: (i, 0)),
        compiler_params=pltpu.CompilerParams(
            dimension_semantics=("parallel",),
            vmem_limit_bytes=vmem_limit),
    )(x_p, w_p, d_row)


def _common_in_specs(tm, tk, n_pad, c_p, xw_resident):
    a_spec = pl.BlockSpec((tm, tk), lambda i, k, bl, ct: (i, bl[i, k]))
    if xw_resident:
        xw_spec = pl.BlockSpec((n_pad, c_p), lambda i, k, bl, ct: (0, 0))
    else:
        xw_spec = pl.BlockSpec((tk, c_p), lambda i, k, bl, ct: (bl[i, k], 0))
    d_spec = pl.BlockSpec((tm, 1), lambda i, k, bl, ct: (i, 0))
    vec_spec = pl.BlockSpec((1, c_p), lambda i, k, bl, ct: (0, 0))
    return [a_spec, xw_spec, d_spec, vec_spec, vec_spec]


def _gcn_layer1(blk, cnt, a_p, xw1, d_row, b1, al1, w2, *, tm, tk,
                xw_resident, vmem_limit):
    n_pad = a_p.shape[0]
    hid_p = xw1.shape[1]
    out_p = w2.shape[1]
    in_specs = _common_in_specs(tm, tk, n_pad, hid_p, xw_resident) + [
        pl.BlockSpec((hid_p, out_p), lambda i, k, bl, ct: (0, 0)),   # W2
    ]
    return pl.pallas_call(
        make_layer1_kernel(xw_resident=xw_resident, tk=tk),
        out_shape=jax.ShapeDtypeStruct((n_pad, out_p), jnp.bfloat16),
        grid_spec=pltpu.PrefetchScalarGridSpec(
            num_scalar_prefetch=2,
            grid=(n_pad // tm, n_pad // tk),        # reduction axis last
            in_specs=in_specs,
            out_specs=pl.BlockSpec((tm, out_p), lambda i, k, bl, ct: (i, 0)),
            scratch_shapes=[pltpu.VMEM((tm, hid_p), jnp.float32)]),
        compiler_params=pltpu.CompilerParams(
            dimension_semantics=("parallel", "arbitrary"),
            vmem_limit_bytes=vmem_limit),
    )(blk, cnt, a_p, xw1, d_row, b1, al1, w2)


def _gcn_layer2_q(blk, cnt, a_p, xw2, d_row, b2, al2, mu_t, mu_sq, kmask, *,
                  tm, tk, xw_resident, vmem_limit):
    n_pad = a_p.shape[0]
    out_p = xw2.shape[1]
    k_p = mu_t.shape[1]
    in_specs = _common_in_specs(tm, tk, n_pad, out_p, xw_resident) + [
        pl.BlockSpec((out_p, k_p), lambda i, k, bl, ct: (0, 0)),     # mu^T
        pl.BlockSpec((1, k_p), lambda i, k, bl, ct: (0, 0)),         # ||mu||^2
        pl.BlockSpec((1, k_p), lambda i, k, bl, ct: (0, 0)),         # cluster mask
    ]
    return pl.pallas_call(
        make_layer2_q_kernel(xw_resident=xw_resident, tk=tk),
        out_shape=(jax.ShapeDtypeStruct((n_pad, out_p), jnp.float32),
                   jax.ShapeDtypeStruct((n_pad, k_p), jnp.float32)),
        grid_spec=pltpu.PrefetchScalarGridSpec(
            num_scalar_prefetch=2,
            grid=(n_pad // tm, n_pad // tk),
            in_specs=in_specs,
            out_specs=(pl.BlockSpec((tm, out_p), lambda i, k, bl, ct: (i, 0)),
                       pl.BlockSpec((tm, k_p), lambda i, k, bl, ct: (i, 0))),
            scratch_shapes=[pltpu.VMEM((tm, out_p), jnp.float32)]),
        compiler_params=pltpu.CompilerParams(
            dimension_semantics=("parallel", "arbitrary"),
            vmem_limit_bytes=vmem_limit),
    )(blk, cnt, a_p, xw2, d_row, b2, al2, mu_t, mu_sq, kmask)


def build_adj(edge_index, n, n_pad):
    """Raw 0/1 adjacency (undirected, self loops) in int8 + D^-1/2 vector."""
    src, dst = edge_index[0], edge_index[1]
    a = jnp.zeros((n_pad, n_pad), jnp.float32)
    a = a.at[src, dst].set(1.0)
    a = a.at[dst, src].set(1.0)                       # symmetrize (undirected)
    diag = jnp.arange(n)
    a = a.at[diag, diag].set(1.0)                     # self loops (real nodes)
    deg = jnp.sum(a, axis=1)
    d_inv_sqrt = jnp.where(deg > 0.0,
                           jax.lax.rsqrt(jnp.where(deg > 0.0, deg, 1.0)), 0.0)
    return a.astype(jnp.int8), d_inv_sqrt


def _block_structure(a_p, tm, tk):
    """Per-row-tile list of nonzero column blocks (padded slots repeat the last
    valid block index so their DMA is elided) + per-row-tile count."""
    n_pad = a_p.shape[0]
    n_rt, n_ct = n_pad // tm, n_pad // tk
    nz = jnp.any(a_p.reshape(n_rt, tm, n_ct, tk) != 0, axis=(1, 3))  # (n_rt,n_ct)
    cnt = jnp.sum(nz, axis=1).astype(jnp.int32)
    order = jnp.argsort((~nz).astype(jnp.int32), axis=1).astype(jnp.int32)
    k_ids = jnp.arange(n_ct, dtype=jnp.int32)[None, :]
    last = jnp.take_along_axis(order, jnp.maximum(cnt - 1, 0)[:, None], axis=1)
    blk = jnp.where(k_ids < cnt[:, None], order, last).astype(jnp.int32)
    return blk, cnt


def prost_nn_sparse_forward(x, edge_index, params):
    """forward(x, adj) -> (z, q). Hot path (matmuls, PReLU, q) runs in Pallas."""
    n, c_in = x.shape
    num_hidden = params["w1"].shape[1]
    out_dim = params["w2"].shape[1]
    n_clusters = params["mu"].shape[0]

    tm, tk, n_pad = _choose_tiles(n)
    c_in_p = _round_up(c_in, _LANE)
    hid_p = _round_up(num_hidden, _LANE)
    out_p = _round_up(out_dim, _LANE)
    k_p = _round_up(n_clusters, _LANE)

    a_p, d_inv_sqrt = build_adj(edge_index, n, n_pad)
    d_row = d_inv_sqrt[:, None].astype(jnp.float32)          # (n_pad, 1)
    blk, cnt = _block_structure(a_p, tm, tk)

    # VMEM budget: keep the XW slab resident when it fits (generation-aware).
    vmem_cap = _vmem_capacity()
    c_big = max(hid_p, out_p)
    working = 2 * tm * tk + 4 * tm * c_big * 4 + (2 << 20)   # A dbl-buf + acc/outs
    slab = n_pad * c_big * 2
    xw_resident = (slab + working) <= int(0.6 * vmem_cap)
    footprint = (slab if xw_resident else 2 * tk * c_big * 2) + working
    vmem_limit = int(min(max(2 * footprint, 32 << 20), int(0.85 * vmem_cap)))

    # Channel dims padded to 128 lanes -> lane-dense stores; matmul operands in
    # bf16 (A in int8), all accumulation / elementwise math in f32.
    x_p = _pad2(x, n_pad, c_in_p).astype(jnp.bfloat16)
    w1_p = _pad2(params["w1"], c_in_p, hid_p).astype(jnp.bfloat16)
    w2_p = _pad2(params["w2"], hid_p, out_p).astype(jnp.bfloat16)
    b1_p = _pad2(params["b1"][None, :].astype(jnp.float32), 1, hid_p)
    b2_p = _pad2(params["b2"][None, :].astype(jnp.float32), 1, out_p)
    al1_p = _pad2(params["alpha1"][None, :].astype(jnp.float32), 1, hid_p)
    al2_p = _pad2(params["alpha2"][None, :].astype(jnp.float32), 1, out_p)
    mu = params["mu"].astype(jnp.float32)
    mu_t_p = _pad2(mu.T, out_p, k_p)
    mu_sq_p = _pad2(jnp.sum(mu * mu, axis=1)[None, :], 1, k_p)
    kmask_p = _pad2(jnp.ones((1, n_clusters), jnp.float32), 1, k_p)

    # layer 1 (fused with h @ W2):  xw1 = D^-1/2 (x @ W1);  xw2 = D^-1/2 h W2
    xw1 = _xw_call(x_p, w1_p, d_row, tm=tm, vmem_limit=vmem_limit)
    xw2 = _gcn_layer1(blk, cnt, a_p, xw1, d_row, b1_p, al1_p, w2_p,
                      tm=tm, tk=tk, xw_resident=xw_resident,
                      vmem_limit=vmem_limit)
    # layer 2 fused with get_q
    z_p, q_p = _gcn_layer2_q(blk, cnt, a_p, xw2, d_row, b2_p, al2_p,
                             mu_t_p, mu_sq_p, kmask_p,
                             tm=tm, tk=tk, xw_resident=xw_resident,
                             vmem_limit=vmem_limit)
    return z_p[:n, :out_dim], q_p[:n, :n_clusters]


# ------------------------------- reference ---------------------------------

def _reference(x, edge_index, p):
    n = x.shape[0]
    s, d = edge_index[0], edge_index[1]
    a = jnp.zeros((n, n), jnp.float32).at[s, d].set(1.0)
    a = a.at[d, s].set(1.0)
    a = a.at[jnp.arange(n), jnp.arange(n)].set(1.0)
    dis = 1.0 / jnp.sqrt(jnp.sum(a, axis=1))
    a_hat = a * dis[:, None] * dis[None, :]

    def prelu(v, alpha):
        return jnp.where(v > 0, v, alpha[None, :] * v)

    h = prelu(a_hat @ (x @ p["w1"]) + p["b1"][None, :], p["alpha1"])
    z = prelu(a_hat @ (h @ p["w2"]) + p["b2"][None, :], p["alpha2"])
    d2 = jnp.sum((z[:, None, :] - p["mu"][None, :, :]) ** 2, axis=2)
    qq = 1.0 / (1.0 + d2 / BETA + 1e-8)
    qq = qq ** (BETA + 1.0) / 2.0
    qq = qq / jnp.sum(qq, axis=1, keepdims=True)
    return z, qq


def _run_case(key, *, n, n_edges, in_dim, num_hidden, out_dim, k_clusters):
    ks = jax.random.split(key, 6)
    x = jax.random.normal(ks[0], (n, in_dim), jnp.float32)
    src = jax.random.randint(ks[1], (n_edges,), 0, n)
    dst = jax.random.randint(ks[2], (n_edges,), 0, n)
    edge_index = jnp.stack([src, dst])                   # sparse adjacency (2, E)

    params = {
        "w1": jax.random.normal(ks[3], (in_dim, num_hidden), jnp.float32)
              * (1.0 / jnp.sqrt(in_dim)),
        "b1": jnp.zeros((num_hidden,), jnp.float32),
        "w2": jax.random.normal(ks[4], (num_hidden, out_dim), jnp.float32)
              * (1.0 / jnp.sqrt(num_hidden)),
        "b2": jnp.zeros((out_dim,), jnp.float32),
        "alpha1": jnp.full((num_hidden,), 0.25, jnp.float32),   # PReLU default
        "alpha2": jnp.full((out_dim,), 0.25, jnp.float32),
        "mu": jax.random.normal(ks[5], (k_clusters, out_dim), jnp.float32),
    }

    z, q = jax.jit(prost_nn_sparse_forward)(x, edge_index, params)
    jax.block_until_ready((z, q))

    z_ref, q_ref = _reference(x, edge_index, params)
    assert z.shape == (n, out_dim) and q.shape == (n, k_clusters)
    assert bool(jnp.all(jnp.isfinite(z))) and bool(jnp.all(jnp.isfinite(q)))
    assert bool(jnp.allclose(jnp.sum(q, axis=1), 1.0, atol=1e-4))
    # loose tolerance: kernel uses bf16 matmul operands + approx reciprocal
    assert bool(jnp.allclose(z, z_ref, atol=1e-1, rtol=1e-1)), "z mismatch"
    assert bool(jnp.allclose(q, q_ref, atol=5e-2)), "q mismatch"


# ---------------------------------- main -----------------------------------

if __name__ == "__main__":
    key = jax.random.PRNGKey(0)
    k_small, k_med = jax.random.split(key)

    # Small case: single-tile path (n_pad = 128).
    _run_case(k_small, n=32, n_edges=64,
              in_dim=16, num_hidden=32, out_dim=8, k_clusters=4)

    # Medium case: tiled path (tm=512, tk=2048, grid (8, 2)), exercises the
    # block-sparse skip (fully padded row tiles), resident XW slab, fused W2.
    _run_case(k_med, n=2300, n_edges=4096,
              in_dim=16, num_hidden=32, out_dim=8, k_clusters=4)

    print("KERNEL_OK")
</pallas_src>

<mosaic_0001>
module attributes {stable_mosaic.version = 11 : i64} {
  func.func @xw_kernel(%arg0: i32, %arg1: memref<128x128xbf16, #tpu.memory_space<vmem>>, %arg2: memref<128x128xbf16, #tpu.memory_space<vmem>>, %arg3: memref<128x1xf32, #tpu.memory_space<vmem>>, %arg4: memref<128x128xbf16, #tpu.memory_space<vmem>>) attributes {dimension_semantics = [#tpu.dimension_semantics<parallel>], iteration_bounds = array<i64: 1>, scalar_prefetch = 0 : i64, scratch_operands = 0 : i64, tpu.core_type = #tpu.core_type<tc>, window_params = [{transform_indices = @transform_0, window_bounds = array<i64: 128, 128>}, {pipeline_mode = #tpu.pipeline_mode<synchronous>, transform_indices = @transform_1, window_bounds = array<i64: 128, 128>}, {transform_indices = @transform_2, window_bounds = array<i64: 128, 1>}, {transform_indices = @transform_3, window_bounds = array<i64: 128, 128>}]} {
    %c0 = arith.constant 0 : index
    %c0_0 = arith.constant 0 : index
    %0 = vector.load %arg1[%c0, %c0_0] : memref<128x128xbf16, #tpu.memory_space<vmem>>, vector<128x128xbf16>
    %c0_1 = arith.constant 0 : index
    %c0_2 = arith.constant 0 : index
    %1 = vector.load %arg2[%c0_1, %c0_2] : memref<128x128xbf16, #tpu.memory_space<vmem>>, vector<128x128xbf16>
    %cst = arith.constant dense<0.000000e+00> : vector<128x128xf32>
    %2 = tpu.matmul %0, %1, %cst {dimension_numbers = #tpu.dot_dimension_numbers<[1], [0], [0], [1], [0, 0, 1, 1], [], []>} : vector<128x128xbf16>, vector<128x128xbf16>, vector<128x128xf32> -> vector<128x128xf32>
    %c0_3 = arith.constant 0 : index
    %c0_4 = arith.constant 0 : index
    %3 = vector.load %arg3[%c0_3, %c0_4] : memref<128x1xf32, #tpu.memory_space<vmem>>, vector<128x1xf32>
    %4 = vector.broadcast %3 : vector<128x1xf32> to vector<128x128xf32>
    %5 = arith.mulf %2, %4 : vector<128x128xf32>
    %6 = arith.truncf %5 : vector<128x128xf32> to vector<128x128xbf16>
    %c0_5 = arith.constant 0 : index
    %c0_6 = arith.constant 0 : index
    %7 = vector.load %arg4[%c0_5, %c0_6] : memref<128x128xbf16, #tpu.memory_space<vmem>>, vector<128x128xbf16>
    tpu.vector_store %arg4[%c0_5, %c0_6], %6 {strides = array<i32>} : memref<128x128xbf16, #tpu.memory_space<vmem>>, vector<128x128xbf16>,
    return
  }
  func.func @transform_0(%arg0: i32) -> (i32, i32) {
    %c0_i32 = arith.constant 0 : i32
    %c0_i32_0 = arith.constant 0 : i32
    return %arg0, %c0_i32 : i32, i32
  }
  func.func @transform_1(%arg0: i32) -> (i32, i32) {
    %c0_i32 = arith.constant 0 : i32
    %c0_i32_0 = arith.constant 0 : i32
    %c0_i32_1 = arith.constant 0 : i32
    return %c0_i32, %c0_i32_0 : i32, i32
  }
  func.func @transform_2(%arg0: i32) -> (i32, i32) {
    %c0_i32 = arith.constant 0 : i32
    %c0_i32_0 = arith.constant 0 : i32
    return %arg0, %c0_i32 : i32, i32
  }
  func.func @transform_3(%arg0: i32) -> (i32, i32) {
    %c0_i32 = arith.constant 0 : i32
    %c0_i32_0 = arith.constant 0 : i32
    return %arg0, %c0_i32 : i32, i32
  }
}

module attributes {stable_mosaic.version = 11 : i64} {
  func.func @kernel(%arg0: i32, %arg1: i32, %arg2: memref<1x1xi32, #tpu.memory_space<smem>>, %arg3: memref<1xi32, #tpu.memory_space<smem>>, %arg4: memref<128x128xi8, #tpu.memory_space<vmem>>, %arg5: memref<128x128xbf16, #tpu.memory_space<vmem>>, %arg6: memref<128x1xf32, #tpu.memory_space<vmem>>, %arg7: memref<1x128xf32, #tpu.memory_space<vmem>>, %arg8: memref<1x128xf32, #tpu.memory_space<vmem>>, %arg9: memref<128x128xbf16, #tpu.memory_space<vmem>>, %arg10: memref<128x128xbf16, #tpu.memory_space<vmem>>, %arg11: memref<128x128xf32, #tpu.memory_space<vmem>>) attributes {dimension_semantics = [#tpu.dimension_semantics<parallel>, #tpu.dimension_semantics<arbitrary>], iteration_bounds = array<i64: 1, 1>, scalar_prefetch = 2 : i64, scratch_operands = 1 : i64, tpu.core_type = #tpu.core_type<tc>, window_params = [{transform_indices = @transform_0, window_bounds = array<i64: 128, 128>}, {pipeline_mode = #tpu.pipeline_mode<synchronous>, transform_indices = @transform_1, window_bounds = array<i64: 128, 128>}, {transform_indices = @transform_2, window_bounds = array<i64: 128, 1>}, {pipeline_mode = #tpu.pipeline_mode<synchronous>, transform_indices = @transform_3, window_bounds = array<i64: 1, 128>}, {pipeline_mode = #tpu.pipeline_mode<synchronous>, transform_indices = @transform_4, window_bounds = array<i64: 1, 128>}, {pipeline_mode = #tpu.pipeline_mode<synchronous>, transform_indices = @transform_5, window_bounds = array<i64: 128, 128>}, {transform_indices = @transform_6, window_bounds = array<i64: 128, 128>}]} {
    %c0_i32 = arith.constant 0 : i32
    %0 = arith.cmpi eq, %arg1, %c0_i32 : i32
    %1 = arith.extui %0 : i1 to i32
    %c0_i32_0 = arith.constant 0 : i32
    %2 = arith.cmpi ne, %1, %c0_i32_0 : i32
    scf.if %2 {
      %cst = arith.constant 0.000000e+00 : f32
      %11 = vector.broadcast %cst : f32 to vector<128x128xf32>
      %c0 = arith.constant 0 : index
      %c0_4 = arith.constant 0 : index
      %12 = vector.load %arg11[%c0, %c0_4] : memref<128x128xf32, #tpu.memory_space<vmem>>, vector<128x128xf32>
      tpu.vector_store %arg11[%c0, %c0_4], %11 {strides = array<i32>} : memref<128x128xf32, #tpu.memory_space<vmem>>, vector<128x128xf32>,
    } else {
    }
    %3 = arith.index_cast %arg0 : i32 to index
    %4 = memref.load %arg3[%3] : memref<1xi32, #tpu.memory_space<smem>>
    %5 = arith.cmpi slt, %arg1, %4 : i32
    %6 = arith.extui %5 : i1 to i32
    %c0_i32_1 = arith.constant 0 : i32
    %7 = arith.cmpi ne, %6, %c0_i32_1 : i32
    scf.if %7 {
      %11 = arith.index_cast %arg0 : i32 to index
      %12 = arith.index_cast %arg1 : i32 to index
      %13 = memref.load %arg2[%11, %12] : memref<1x1xi32, #tpu.memory_space<smem>>
      %c128_i32 = arith.constant 128 : i32
      %14 = arith.muli %13, %c128_i32 : i32
      %15 = tpu.assume_multiple %14, 128 : i32
      %16 = arith.index_cast %15 : i32 to index
      %c0 = arith.constant 0 : index
      %17 = vector.load %arg5[%16, %c0] : memref<128x128xbf16, #tpu.memory_space<vmem>>, vector<128x128xbf16>
      %c0_4 = arith.constant 0 : index
      %c0_5 = arith.constant 0 : index
      %18 = vector.load %arg11[%c0_4, %c0_5] : memref<128x128xf32, #tpu.memory_space<vmem>>, vector<128x128xf32>
      %c0_6 = arith.constant 0 : index
      %c0_7 = arith.constant 0 : index
      %19 = vector.load %arg4[%c0_6, %c0_7] : memref<128x128xi8, #tpu.memory_space<vmem>>, vector<128x128xi8>
      %20 = arith.sitofp %19 : vector<128x128xi8> to vector<128x128xbf16>
      %cst = arith.constant dense<0.000000e+00> : vector<128x128xf32>
      %21 = tpu.matmul %20, %17, %cst {dimension_numbers = #tpu.dot_dimension_numbers<[1], [0], [0], [1], [0, 0, 1, 1], [], []>} : vector<128x128xbf16>, vector<128x128xbf16>, vector<128x128xf32> -> vector<128x128xf32>
      %22 = arith.addf %18, %21 : vector<128x128xf32>
      %c0_8 = arith.constant 0 : index
      %c0_9 = arith.constant 0 : index
      %23 = vector.load %arg11[%c0_8, %c0_9] : memref<128x128xf32, #tpu.memory_space<vmem>>, vector<128x128xf32>
      tpu.vector_store %arg11[%c0_8, %c0_9], %22 {strides = array<i32>} : memref<128x128xf32, #tpu.memory_space<vmem>>, vector<128x128xf32>,
    } else {
    }
    %c0_i32_2 = arith.constant 0 : i32
    %8 = arith.cmpi eq, %arg1, %c0_i32_2 : i32
    %9 = arith.extui %8 : i1 to i32
    %c0_i32_3 = arith.constant 0 : i32
    %10 = arith.cmpi ne, %9, %c0_i32_3 : i32
    scf.if %10 {
      %c0 = arith.constant 0 : index
      %c0_4 = arith.constant 0 : index
      %11 = vector.load %arg11[%c0, %c0_4] : memref<128x128xf32, #tpu.memory_space<vmem>>, vector<128x128xf32>
      %c0_5 = arith.constant 0 : index
      %c0_6 = arith.constant 0 : index
      %12 = vector.load %arg6[%c0_5, %c0_6] : memref<128x1xf32, #tpu.memory_space<vmem>>, vector<128x1xf32>
      %13 = vector.broadcast %12 : vector<128x1xf32> to vector<128x128xf32>
      %14 = arith.mulf %11, %13 : vector<128x128xf32>
      %c0_7 = arith.constant 0 : index
      %c0_8 = arith.constant 0 : index
      %15 = vector.load %arg7[%c0_7, %c0_8] : memref<1x128xf32, #tpu.memory_space<vmem>>, vector<1x128xf32>
      %16 = vector.broadcast %15 : vector<1x128xf32> to vector<128x128xf32>
      %17 = arith.addf %14, %16 : vector<128x128xf32>
      %cst = arith.constant 0.000000e+00 : f32
      %18 = vector.broadcast %cst : f32 to vector<128x128xf32>
      %19 = arith.cmpf ogt, %17, %18 : vector<128x128xf32>
      %c0_9 = arith.constant 0 : index
      %c0_10 = arith.constant 0 : index
      %20 = vector.load %arg8[%c0_9, %c0_10] : memref<1x128xf32, #tpu.memory_space<vmem>>, vector<1x128xf32>
      %21 = vector.broadcast %20 : vector<1x128xf32> to vector<128x128xf32>
      %22 = arith.mulf %21, %17 : vector<128x128xf32>
      %23 = arith.select %19, %17, %22 : vector<128x128xi1>, vector<128x128xf32>
      %c0_11 = arith.constant 0 : index
      %c0_12 = arith.constant 0 : index
      %24 = vector.load %arg6[%c0_11, %c0_12] : memref<128x1xf32, #tpu.memory_space<vmem>>, vector<128x1xf32>
      %25 = vector.broadcast %24 : vector<128x1xf32> to vector<128x128xf32>
      %26 = arith.mulf %23, %25 : vector<128x128xf32>
      %27 = arith.truncf %26 : vector<128x128xf32> to vector<128x128xbf16>
      %c0_13 = arith.constant 0 : index
      %c0_14 = arith.constant 0 : index
      %28 = vector.load %arg9[%c0_13, %c0_14] : memref<128x128xbf16, #tpu.memory_space<vmem>>, vector<128x128xbf16>
      %cst_15 = arith.constant dense<0.000000e+00> : vector<128x128xf32>
      %29 = tpu.matmul %27, %28, %cst_15 {dimension_numbers = #tpu.dot_dimension_numbers<[1], [0], [0], [1], [0, 0, 1, 1], [], []>} : vector<128x128xbf16>, vector<128x128xbf16>, vector<128x128xf32> -> vector<128x128xf32>
      %30 = arith.truncf %29 : vector<128x128xf32> to vector<128x128xbf16>
      %c0_16 = arith.constant 0 : index
      %c0_17 = arith.constant 0 : index
      %31 = vector.load %arg10[%c0_16, %c0_17] : memref<128x128xbf16, #tpu.memory_space<vmem>>, vector<128x128xbf16>
      tpu.vector_store %arg10[%c0_16, %c0_17], %30 {strides = array<i32>} : memref<128x128xbf16, #tpu.memory_space<vmem>>, vector<128x128xbf16>,
    } else {
    }
    return
  }
  func.func @transform_0(%arg0: i32, %arg1: i32, %arg2: memref<1x1xi32, #tpu.memory_space<smem>>, %arg3: memref<1xi32, #tpu.memory_space<smem>>) -> (i32, i32) {
    %0 = arith.index_cast %arg0 : i32 to index
    %1 = arith.index_cast %arg1 : i32 to index
    %2 = memref.load %arg2[%0, %1] : memref<1x1xi32, #tpu.memory_space<smem>>
    %c0_i32 = arith.constant 0 : i32
    return %arg0, %2 : i32, i32
  }
  func.func @transform_1(%arg0: i32, %arg1: i32, %arg2: memref<1x1xi32, #tpu.memory_space<smem>>, %arg3: memref<1xi32, #tpu.memory_space<smem>>) -> (i32, i32) {
    %c0_i32 = arith.constant 0 : i32
    %c0_i32_0 = arith.constant 0 : i32
    %c0_i32_1 = arith.constant 0 : i32
    return %c0_i32, %c0_i32_0 : i32, i32
  }
  func.func @transform_2(%arg0: i32, %arg1: i32, %arg2: memref<1x1xi32, #tpu.memory_space<smem>>, %arg3: memref<1xi32, #tpu.memory_space<smem>>) -> (i32, i32) {
    %c0_i32 = arith.constant 0 : i32
    %c0_i32_0 = arith.constant 0 : i32
    return %arg0, %c0_i32 : i32, i32
  }
  func.func @transform_3(%arg0: i32, %arg1: i32, %arg2: memref<1x1xi32, #tpu.memory_space<smem>>, %arg3: memref<1xi32, #tpu.memory_space<smem>>) -> (i32, i32) {
    %c0_i32 = arith.constant 0 : i32
    %c0_i32_0 = arith.constant 0 : i32
    %c0_i32_1 = arith.constant 0 : i32
    return %c0_i32, %c0_i32_0 : i32, i32
  }
  func.func @transform_4(%arg0: i32, %arg1: i32, %arg2: memref<1x1xi32, #tpu.memory_space<smem>>, %arg3: memref<1xi32, #tpu.memory_space<smem>>) -> (i32, i32) {
    %c0_i32 = arith.constant 0 : i32
    %c0_i32_0 = arith.constant 0 : i32
    %c0_i32_1 = arith.constant 0 : i32
    return %c0_i32, %c0_i32_0 : i32, i32
  }
  func.func @transform_5(%arg0: i32, %arg1: i32, %arg2: memref<1x1xi32, #tpu.memory_space<smem>>, %arg3: memref<1xi32, #tpu.memory_space<smem>>) -> (i32, i32) {
    %c0_i32 = arith.constant 0 : i32
    %c0_i32_0 = arith.constant 0 : i32
    %c0_i32_1 = arith.constant 0 : i32
    return %c0_i32, %c0_i32_0 : i32, i32
  }
  func.func @transform_6(%arg0: i32, %arg1: i32, %arg2: memref<1x1xi32, #tpu.memory_space<smem>>, %arg3: memref<1xi32, #tpu.memory_space<smem>>) -> (i32, i32) {
    %c0_i32 = arith.constant 0 : i32
    %c0_i32_0 = arith.constant 0 : i32
    return %arg0, %c0_i32 : i32, i32
  }
}

module attributes {stable_mosaic.version = 11 : i64} {
  func.func @kernel(%arg0: i32, %arg1: i32, %arg2: memref<1x1xi32, #tpu.memory_space<smem>>, %arg3: memref<1xi32, #tpu.memory_space<smem>>, %arg4: memref<128x128xi8, #tpu.memory_space<vmem>>, %arg5: memref<128x128xbf16, #tpu.memory_space<vmem>>, %arg6: memref<128x1xf32, #tpu.memory_space<vmem>>, %arg7: memref<1x128xf32, #tpu.memory_space<vmem>>, %arg8: memref<1x128xf32, #tpu.memory_space<vmem>>, %arg9: memref<128x128xf32, #tpu.memory_space<vmem>>, %arg10: memref<1x128xf32, #tpu.memory_space<vmem>>, %arg11: memref<1x128xf32, #tpu.memory_space<vmem>>, %arg12: memref<128x128xf32, #tpu.memory_space<vmem>>, %arg13: memref<128x128xf32, #tpu.memory_space<vmem>>, %arg14: memref<128x128xf32, #tpu.memory_space<vmem>>) attributes {dimension_semantics = [#tpu.dimension_semantics<parallel>, #tpu.dimension_semantics<arbitrary>], iteration_bounds = array<i64: 1, 1>, scalar_prefetch = 2 : i64, scratch_operands = 1 : i64, tpu.core_type = #tpu.core_type<tc>, window_params = [{transform_indices = @transform_0, window_bounds = array<i64: 128, 128>}, {pipeline_mode = #tpu.pipeline_mode<synchronous>, transform_indices = @transform_1, window_bounds = array<i64: 128, 128>}, {transform_indices = @transform_2, window_bounds = array<i64: 128, 1>}, {pipeline_mode = #tpu.pipeline_mode<synchronous>, transform_indices = @transform_3, window_bounds = array<i64: 1, 128>}, {pipeline_mode = #tpu.pipeline_mode<synchronous>, transform_indices = @transform_4, window_bounds = array<i64: 1, 128>}, {pipeline_mode = #tpu.pipeline_mode<synchronous>, transform_indices = @transform_5, window_bounds = array<i64: 128, 128>}, {pipeline_mode = #tpu.pipeline_mode<synchronous>, transform_indices = @transform_6, window_bounds = array<i64: 1, 128>}, {pipeline_mode = #tpu.pipeline_mode<synchronous>, transform_indices = @transform_7, window_bounds = array<i64: 1, 128>}, {transform_indices = @transform_8, window_bounds = array<i64: 128, 128>}, {transform_indices = @transform_9, window_bounds = array<i64: 128, 128>}]} {
    %c0_i32 = arith.constant 0 : i32
    %0 = arith.cmpi eq, %arg1, %c0_i32 : i32
    %1 = arith.extui %0 : i1 to i32
    %c0_i32_0 = arith.constant 0 : i32
    %2 = arith.cmpi ne, %1, %c0_i32_0 : i32
    scf.if %2 {
      %cst = arith.constant 0.000000e+00 : f32
      %11 = vector.broadcast %cst : f32 to vector<128x128xf32>
      %c0 = arith.constant 0 : index
      %c0_4 = arith.constant 0 : index
      %12 = vector.load %arg14[%c0, %c0_4] : memref<128x128xf32, #tpu.memory_space<vmem>>, vector<128x128xf32>
      tpu.vector_store %arg14[%c0, %c0_4], %11 {strides = array<i32>} : memref<128x128xf32, #tpu.memory_space<vmem>>, vector<128x128xf32>,
    } else {
    }
    %3 = arith.index_cast %arg0 : i32 to index
    %4 = memref.load %arg3[%3] : memref<1xi32, #tpu.memory_space<smem>>
    %5 = arith.cmpi slt, %arg1, %4 : i32
    %6 = arith.extui %5 : i1 to i32
    %c0_i32_1 = arith.constant 0 : i32
    %7 = arith.cmpi ne, %6, %c0_i32_1 : i32
    scf.if %7 {
      %11 = arith.index_cast %arg0 : i32 to index
      %12 = arith.index_cast %arg1 : i32 to index
      %13 = memref.load %arg2[%11, %12] : memref<1x1xi32, #tpu.memory_space<smem>>
      %c128_i32 = arith.constant 128 : i32
      %14 = arith.muli %13, %c128_i32 : i32
      %15 = tpu.assume_multiple %14, 128 : i32
      %16 = arith.index_cast %15 : i32 to index
      %c0 = arith.constant 0 : index
      %17 = vector.load %arg5[%16, %c0] : memref<128x128xbf16, #tpu.memory_space<vmem>>, vector<128x128xbf16>
      %c0_4 = arith.constant 0 : index
      %c0_5 = arith.constant 0 : index
      %18 = vector.load %arg14[%c0_4, %c0_5] : memref<128x128xf32, #tpu.memory_space<vmem>>, vector<128x128xf32>
      %c0_6 = arith.constant 0 : index
      %c0_7 = arith.constant 0 : index
      %19 = vector.load %arg4[%c0_6, %c0_7] : memref<128x128xi8, #tpu.memory_space<vmem>>, vector<128x128xi8>
      %20 = arith.sitofp %19 : vector<128x128xi8> to vector<128x128xbf16>
      %cst = arith.constant dense<0.000000e+00> : vector<128x128xf32>
      %21 = tpu.matmul %20, %17, %cst {dimension_numbers = #tpu.dot_dimension_numbers<[1], [0], [0], [1], [0, 0, 1, 1], [], []>} : vector<128x128xbf16>, vector<128x128xbf16>, vector<128x128xf32> -> vector<128x128xf32>
      %22 = arith.addf %18, %21 : vector<128x128xf32>
      %c0_8 = arith.constant 0 : index
      %c0_9 = arith.constant 0 : index
      %23 = vector.load %arg14[%c0_8, %c0_9] : memref<128x128xf32, #tpu.memory_space<vmem>>, vector<128x128xf32>
      tpu.vector_store %arg14[%c0_8, %c0_9], %22 {strides = array<i32>} : memref<128x128xf32, #tpu.memory_space<vmem>>, vector<128x128xf32>,
    } else {
    }
    %c0_i32_2 = arith.constant 0 : i32
    %8 = arith.cmpi eq, %arg1, %c0_i32_2 : i32
    %9 = arith.extui %8 : i1 to i32
    %c0_i32_3 = arith.constant 0 : i32
    %10 = arith.cmpi ne, %9, %c0_i32_3 : i32
    scf.if %10 {
      %c0 = arith.constant 0 : index
      %c0_4 = arith.constant 0 : index
      %11 = vector.load %arg14[%c0, %c0_4] : memref<128x128xf32, #tpu.memory_space<vmem>>, vector<128x128xf32>
      %c0_5 = arith.constant 0 : index
      %c0_6 = arith.constant 0 : index
      %12 = vector.load %arg6[%c0_5, %c0_6] : memref<128x1xf32, #tpu.memory_space<vmem>>, vector<128x1xf32>
      %13 = vector.broadcast %12 : vector<128x1xf32> to vector<128x128xf32>
      %14 = arith.mulf %11, %13 : vector<128x128xf32>
      %c0_7 = arith.constant 0 : index
      %c0_8 = arith.constant 0 : index
      %15 = vector.load %arg7[%c0_7, %c0_8] : memref<1x128xf32, #tpu.memory_space<vmem>>, vector<1x128xf32>
      %16 = vector.broadcast %15 : vector<1x128xf32> to vector<128x128xf32>
      %17 = arith.addf %14, %16 : vector<128x128xf32>
      %cst = arith.constant 0.000000e+00 : f32
      %18 = vector.broadcast %cst : f32 to vector<128x128xf32>
      %19 = arith.cmpf ogt, %17, %18 : vector<128x128xf32>
      %c0_9 = arith.constant 0 : index
      %c0_10 = arith.constant 0 : index
      %20 = vector.load %arg8[%c0_9, %c0_10] : memref<1x128xf32, #tpu.memory_space<vmem>>, vector<1x128xf32>
      %21 = vector.broadcast %20 : vector<1x128xf32> to vector<128x128xf32>
      %22 = arith.mulf %21, %17 : vector<128x128xf32>
      %23 = arith.select %19, %17, %22 : vector<128x128xi1>, vector<128x128xf32>
      %c0_11 = arith.constant 0 : index
      %c0_12 = arith.constant 0 : index
      %24 = vector.load %arg12[%c0_11, %c0_12] : memref<128x128xf32, #tpu.memory_space<vmem>>, vector<128x128xf32>
      tpu.vector_store %arg12[%c0_11, %c0_12], %23 {strides = array<i32>} : memref<128x128xf32, #tpu.memory_space<vmem>>, vector<128x128xf32>,
      %25 = arith.mulf %23, %23 : vector<128x128xf32>
      %cst_13 = arith.constant dense<0.000000e+00> : vector<128xf32>
      %26 = vector.multi_reduction <add>, %25, %cst_13 [1] : vector<128x128xf32> to vector<128xf32>
      %27 = vector.shape_cast %26 : vector<128xf32> to vector<128x1xf32>
      %c0_14 = arith.constant 0 : index
      %c0_15 = arith.constant 0 : index
      %28 = vector.load %arg9[%c0_14, %c0_15] : memref<128x128xf32, #tpu.memory_space<vmem>>, vector<128x128xf32>
      %cst_16 = arith.constant dense<0.000000e+00> : vector<128x128xf32>
      %29 = tpu.matmul %23, %28, %cst_16 {dimension_numbers = #tpu.dot_dimension_numbers<[1], [0], [0], [1], [0, 0, 1, 1], [], []>} : vector<128x128xf32>, vector<128x128xf32>, vector<128x128xf32> -> vector<128x128xf32>
      %c0_17 = arith.constant 0 : index
      %c0_18 = arith.constant 0 : index
      %30 = vector.load %arg10[%c0_17, %c0_18] : memref<1x128xf32, #tpu.memory_space<vmem>>, vector<1x128xf32>
      %31 = vector.broadcast %27 : vector<128x1xf32> to vector<128x128xf32>
      %32 = vector.broadcast %30 : vector<1x128xf32> to vector<128x128xf32>
      %33 = arith.addf %31, %32 : vector<128x128xf32>
      %cst_19 = arith.constant 2.000000e+00 : f32
      %34 = vector.broadcast %cst_19 : f32 to vector<128x128xf32>
      %35 = arith.mulf %34, %29 : vector<128x128xf32>
      %36 = arith.subf %33, %35 : vector<128x128xf32>
      %cst_20 = arith.constant 0.000000e+00 : f32
      %37 = vector.broadcast %cst_20 : f32 to vector<128x128xf32>
      %38 = arith.maximumf %36, %37 : vector<128x128xf32>
      %cst_21 = arith.constant 2.000000e+00 : f32
      %39 = vector.broadcast %cst_21 : f32 to vector<128x128xf32>
      %40 = arith.mulf %38, %39 : vector<128x128xf32>
      %cst_22 = arith.constant 1.000000e+00 : f32
      %41 = vector.broadcast %cst_22 : f32 to vector<128x128xf32>
      %42 = arith.addf %41, %40 : vector<128x128xf32>
      %cst_23 = arith.constant 9.99999993E-9 : f32
      %43 = vector.broadcast %cst_23 : f32 to vector<128x128xf32>
      %44 = arith.addf %42, %43 : vector<128x128xf32>
      %45 = tpu.reciprocal %44 {approx = true} : vector<128x128xf32> -> vector<128x128xf32>
      %46 = math.sqrt %45 : vector<128x128xf32>
      %47 = arith.mulf %45, %46 : vector<128x128xf32>
      %cst_24 = arith.constant 5.000000e-01 : f32
      %48 = vector.broadcast %cst_24 : f32 to vector<128x128xf32>
      %49 = arith.mulf %47, %48 : vector<128x128xf32>
      %c0_25 = arith.constant 0 : index
      %c0_26 = arith.constant 0 : index
      %50 = vector.load %arg11[%c0_25, %c0_26] : memref<1x128xf32, #tpu.memory_space<vmem>>, vector<1x128xf32>
      %51 = vector.broadcast %50 : vector<1x128xf32> to vector<128x128xf32>
      %52 = arith.mulf %49, %51 : vector<128x128xf32>
      %cst_27 = arith.constant dense<0.000000e+00> : vector<128xf32>
      %53 = vector.multi_reduction <add>, %52, %cst_27 [1] : vector<128x128xf32> to vector<128xf32>
      %54 = vector.shape_cast %53 : vector<128xf32> to vector<128x1xf32>
      %55 = vector.broadcast %54 : vector<128x1xf32> to vector<128x128xf32>
      %56 = arith.divf %52, %55 : vector<128x128xf32>
      %c0_28 = arith.constant 0 : index
      %c0_29 = arith.constant 0 : index
      %57 = vector.load %arg13[%c0_28, %c0_29] : memref<128x128xf32, #tpu.memory_space<vmem>>, vector<128x128xf32>
      tpu.vector_store %arg13[%c0_28, %c0_29], %56 {strides = array<i32>} : memref<128x128xf32, #tpu.memory_space<vmem>>, vector<128x128xf32>,
    } else {
    }
    return
  }
  func.func @transform_0(%arg0: i32, %arg1: i32, %arg2: memref<1x1xi32, #tpu.memory_space<smem>>, %arg3: memref<1xi32, #tpu.memory_space<smem>>) -> (i32, i32) {
    %0 = arith.index_cast %arg0 : i32 to index
    %1 = arith.index_cast %arg1 : i32 to index
    %2 = memref.load %arg2[%0, %1] : memref<1x1xi32, #tpu.memory_space<smem>>
    %c0_i32 = arith.constant 0 : i32
    return %arg0, %2 : i32, i32
  }
  func.func @transform_1(%arg0: i32, %arg1: i32, %arg2: memref<1x1xi32, #tpu.memory_space<smem>>, %arg3: memref<1xi32, #tpu.memory_space<smem>>) -> (i32, i32) {
    %c0_i32 = arith.constant 0 : i32
    %c0_i32_0 = arith.constant 0 : i32
    %c0_i32_1 = arith.constant 0 : i32
    return %c0_i32, %c0_i32_0 : i32, i32
  }
  func.func @transform_2(%arg0: i32, %arg1: i32, %arg2: memref<1x1xi32, #tpu.memory_space<smem>>, %arg3: memref<1xi32, #tpu.memory_space<smem>>) -> (i32, i32) {
    %c0_i32 = arith.constant 0 : i32
    %c0_i32_0 = arith.constant 0 : i32
    return %arg0, %c0_i32 : i32, i32
  }
  func.func @transform_3(%arg0: i32, %arg1: i32, %arg2: memref<1x1xi32, #tpu.memory_space<smem>>, %arg3: memref<1xi32, #tpu.memory_space<smem>>) -> (i32, i32) {
    %c0_i32 = arith.constant 0 : i32
    %c0_i32_0 = arith.constant 0 : i32
    %c0_i32_1 = arith.constant 0 : i32
    return %c0_i32, %c0_i32_0 : i32, i32
  }
  func.func @transform_4(%arg0: i32, %arg1: i32, %arg2: memref<1x1xi32, #tpu.memory_space<smem>>, %arg3: memref<1xi32, #tpu.memory_space<smem>>) -> (i32, i32) {
    %c0_i32 = arith.constant 0 : i32
    %c0_i32_0 = arith.constant 0 : i32
    %c0_i32_1 = arith.constant 0 : i32
    return %c0_i32, %c0_i32_0 : i32, i32
  }
  func.func @transform_5(%arg0: i32, %arg1: i32, %arg2: memref<1x1xi32, #tpu.memory_space<smem>>, %arg3: memref<1xi32, #tpu.memory_space<smem>>) -> (i32, i32) {
    %c0_i32 = arith.constant 0 : i32
    %c0_i32_0 = arith.constant 0 : i32
    %c0_i32_1 = arith.constant 0 : i32
    return %c0_i32, %c0_i32_0 : i32, i32
  }
  func.func @transform_6(%arg0: i32, %arg1: i32, %arg2: memref<1x1xi32, #tpu.memory_space<smem>>, %arg3: memref<1xi32, #tpu.memory_space<smem>>) -> (i32, i32) {
    %c0_i32 = arith.constant 0 : i32
    %c0_i32_0 = arith.constant 0 : i32
    %c0_i32_1 = arith.constant 0 : i32
    return %c0_i32, %c0_i32_0 : i32, i32
  }
  func.func @transform_7(%arg0: i32, %arg1: i32, %arg2: memref<1x1xi32, #tpu.memory_space<smem>>, %arg3: memref<1xi32, #tpu.memory_space<smem>>) -> (i32, i32) {
    %c0_i32 = arith.constant 0 : i32
    %c0_i32_0 = arith.constant 0 : i32
    %c0_i32_1 = arith.constant 0 : i32
    return %c0_i32, %c0_i32_0 : i32, i32
  }
  func.func @transform_8(%arg0: i32, %arg1: i32, %arg2: memref<1x1xi32, #tpu.memory_space<smem>>, %arg3: memref<1xi32, #tpu.memory_space<smem>>) -> (i32, i32) {
    %c0_i32 = arith.constant 0 : i32
    %c0_i32_0 = arith.constant 0 : i32
    return %arg0, %c0_i32 : i32, i32
  }
  func.func @transform_9(%arg0: i32, %arg1: i32, %arg2: memref<1x1xi32, #tpu.memory_space<smem>>, %arg3: memref<1xi32, #tpu.memory_space<smem>>) -> (i32, i32) {
    %c0_i32 = arith.constant 0 : i32
    %c0_i32_0 = arith.constant 0 : i32
    return %arg0, %c0_i32 : i32, i32
  }
}

</mosaic_0001>

<bundles_post_ra>
// kernel: prost_nn_sparse_forward.3
= control target key start
LH: loop header
LB: loop body
LE: loop exit
PB: predicated region body
PF: predicated region fallthrough
CT: control target
= control target key end

     0   :  { %v614_v1 = vmov 0   ;;  %s755_s1 = inlined_call_operand.vmem [shape: bf16[128,128], index: 1, kind: input, shape index: {}]   ;;  %s756_s0 = inlined_call_operand.vmem [shape: bf16[128,128], index: 0, kind: input, shape index: {}]   ;;  %s757_s2 = inlined_call_operand.vmem [shape: f32[128,1], index: 2, kind: input, shape index: {}]   ;;  %s758_s3 = inlined_call_operand.vmem [shape: bf16[128,128], index: 3, kind: output, shape index: {}]  }
   0x1   :  { %v598_v0 = vld [vmem:[%s755_s1] sm:$0xff]   ;;  %597 = vset.pattern.permute.xlu1 %v614_v1  ;;  %596 = vset.pattern.permute.xlu0 %v614_v1  ;;  %v599_v2 = vld [vmem:[%s755_s1 + $0x8] sm:$0xff]   ;;  %v600_v3 = vld [vmem:[%s755_s1 + $0x10] sm:$0xff]  }
   0x2   :  { %547 = vmatprep.subr.bf16.mxu0 %v598_v0  ;;  %579 = vmatprep.subr.bf16.mxu1 %v598_v0  ;;  %v601_v4 = vld [vmem:[%s755_s1 + $0x18] sm:$0xff]   ;;  %v606_v5 = vld [vmem:[%s756_s0] sm:$0xff]   ;;  %v603_v8 = vld [vmem:[%s755_s1 + $0x28] sm:$0xff]  }
   0x3   :  { %548 = vmatpush3.bf16.msra.mxu0 %v598_v0  ;;  %587 = vmatpush3.bf16.msra.mxu1 %v598_v0  ;;  %v607_v6 = vld [vmem:[%s756_s0 + $0x20] sm:$0xff]   ;;  %v242_v9 = vld [vmem:[%s757_s2 + $0x10] sm:$0xff]  ;;  %v243_v11 = vld [vmem:[%s757_s2 + $0x18] sm:$0xff] }
   0x4   :  { %549 = vmatprep.subr.bf16.mxu0 %v599_v2  ;;  %580 = vmatprep.subr.bf16.mxu1 %v599_v2  ;;  %v602_v7 = vld [vmem:[%s755_s1 + $0x20] sm:$0xff]   ;;  %v241_v12 = vld [vmem:[%s757_s2 + $0x8] sm:$0xff]  ;;  %v604_v13 = vld [vmem:[%s755_s1 + $0x30] sm:$0xff]  }
   0x5   :  { %563 = vmatprep.mubr.bf16.mxu0 %v606_v5  ;;  %571 = vmatprep.mubr.bf16.mxu1 %v607_v6  ;;  %v240_v10 = vld [vmem:[%s757_s2] sm:$0xff]  ;;  %v245_v14 = vld [vmem:[%s757_s2 + $0x28] sm:$0xff]  ;;  %v605_v16 = vld [vmem:[%s755_s1 + $0x38] sm:$0xff]  }
   0x6   :  { %268 = vperm.xlu1 %597, %v242_v9   ;;  %258 = vperm.xlu0 %596, %v240_v10   ;;  %v244_v15 = vld [vmem:[%s757_s2 + $0x20] sm:$0xff]  ;;  %v247_v17 = vld [vmem:[%s757_s2 + $0x38] sm:$0xff]  ;;  %v246_v18 = vld [vmem:[%s757_s2 + $0x30] sm:$0xff] }
   0x7   :  { %550 = vmatpush3.bf16.msra.mxu0 %v599_v2  ;;  %588 = vmatpush3.bf16.msra.mxu1 %v599_v2  ;;  %v608_v19 = vld [vmem:[%s756_s0 + $0x8] sm:$0xff]   ;;  %v248_v22 = vld [vmem:[%s757_s2 + $0x40] sm:$0xff]  ;;  %v610_v23 = vld [vmem:[%s756_s0 + $0x10] sm:$0xff]  }
   0x8   :  { %551 = vmatprep.subr.bf16.mxu0 %v600_v3  ;;  %581 = vmatprep.subr.bf16.mxu1 %v600_v3  ;;  %v609_v20 = vld [vmem:[%s756_s0 + $0x28] sm:$0xff]   ;;  %v611_v24 = vld [vmem:[%s756_s0 + $0x30] sm:$0xff]   ;;  %v251_v25 = vld [vmem:[%s757_s2 + $0x58] sm:$0xff] }
   0x9   :  { %v249_v21 = vld [vmem:[%s757_s2 + $0x48] sm:$0xff]  ;;  %v250_v26 = vld [vmem:[%s757_s2 + $0x50] sm:$0xff]  ;;  %v612_v27 = vld [vmem:[%s756_s0 + $0x18] sm:$0xff]  }
   0xa   :  { %273 = vperm.xlu1 %597, %v243_v11   ;;  %263 = vperm.xlu0 %596, %v241_v12   ;;  %v613_v28 = vld [vmem:[%s756_s0 + $0x38] sm:$0xff]   ;;  %v253_v29 = vld [vmem:[%s757_s2 + $0x68] sm:$0xff]  ;;  %v252_v30 = vld [vmem:[%s757_s2 + $0x60] sm:$0xff] }
   0xb   :  { %552 = vmatpush3.bf16.msra.mxu0 %v600_v3  ;;  %589 = vmatpush3.bf16.msra.mxu1 %v600_v3  ;;  %v255_v31 = vld [vmem:[%s757_s2 + $0x78] sm:$0xff]  ;;  %v254_v32 = vld [vmem:[%s757_s2 + $0x70] sm:$0xff] }
   0xc   :  { %553 = vmatprep.subr.bf16.mxu0 %v601_v4  ;;  %582 = vmatprep.subr.bf16.mxu1 %v601_v4 }
   0xe   :  { %283 = vperm.xlu1 %597, %v245_v14   ;;  %278 = vperm.xlu0 %596, %v244_v15  }
   0xf   :  { %554 = vmatpush3.bf16.msra.mxu0 %v601_v4  ;;  %590 = vmatpush3.bf16.msra.mxu1 %v601_v4 }
  0x10   :  { %555 = vmatprep.subr.bf16.mxu0 %v602_v7  ;;  %583 = vmatprep.subr.bf16.mxu1 %v602_v7 }
  0x12   :  { %293 = vperm.xlu1 %597, %v247_v17   ;;  %288 = vperm.xlu0 %596, %v246_v18  }
  0x13   :  { %556 = vmatpush3.bf16.msra.mxu0 %v602_v7  ;;  %591 = vmatpush3.bf16.msra.mxu1 %v602_v7 }
  0x14   :  { %557 = vmatprep.subr.bf16.mxu0 %v603_v8  ;;  %584 = vmatprep.subr.bf16.mxu1 %v603_v8 }
  0x16   :  { %303 = vperm.xlu1 %597, %v249_v21   ;;  %298 = vperm.xlu0 %596, %v248_v22  }
  0x17   :  { %558 = vmatpush3.bf16.msra.mxu0 %v603_v8  ;;  %592 = vmatpush3.bf16.msra.mxu1 %v603_v8 }
  0x18   :  { %559 = vmatprep.subr.bf16.mxu0 %v604_v13  ;;  %585 = vmatprep.subr.bf16.mxu1 %v604_v13 }
  0x1a   :  { %313 = vperm.xlu1 %597, %v251_v25   ;;  %308 = vperm.xlu0 %596, %v250_v26  }
  0x1b   :  { %560 = vmatpush3.bf16.msra.mxu0 %v604_v13  ;;  %593 = vmatpush3.bf16.msra.mxu1 %v604_v13 }
  0x1c   :  { %561 = vmatprep.subr.bf16.mxu0 %v605_v16  ;;  %586 = vmatprep.subr.bf16.mxu1 %v605_v16 }
  0x1e   :  { %323 = vperm.xlu1 %597, %v253_v29   ;;  %318 = vperm.xlu0 %596, %v252_v30  }
  0x1f   :  { %562 = vmatpush3.bf16.msra.mxu0 %v605_v16  ;;  %594 = vmatpush3.bf16.msra.mxu1 %v605_v16 }
  0x22   :  { %564 = vmatmul.mubr.bf16.vlgmr.msra.gmra.mrb[0].mxu0 %v608_v19  ;;  %572 = vmatmul.mubr.bf16.vlgmr.msra.gmra.mrb[0].mxu1 %v609_v20 }
  0x23   :  { %567 = vmatprep.mubr.bf16.mxu0 %v610_v23  ;;  %575 = vmatprep.mubr.bf16.mxu1 %v611_v24 }
  0x24   :  { %333 = vperm.xlu1 %597, %v255_v31   ;;  %328 = vperm.xlu0 %596, %v254_v32  }
  0x2a   :  { %568 = vmatmul.mubr.bf16.gmra.mrb[4].mxu0 %v612_v27  ;;  %576 = vmatmul.mubr.bf16.gmra.mrb[4].mxu1 %v613_v28 }
  0x85   :  { %v269_v33 = vpop.permute.xlu1 %268  ;;  %v259_v34 = vpop.permute.xlu0 %258 }
  0x89   :  { %v274_v35 = vpop.permute.xlu1 %273  ;;  %v264_v36 = vpop.permute.xlu0 %263 }
  0x8d   :  { %v284_v37 = vpop.permute.xlu1 %283  ;;  %v279_v38 = vpop.permute.xlu0 %278 }
  0x91   :  { %v294_v39 = vpop.permute.xlu1 %293  ;;  %v289_v40 = vpop.permute.xlu0 %288 }
  0x95   :  { %v304_v41 = vpop.permute.xlu1 %303  ;;  %v299_v42 = vpop.permute.xlu0 %298 }
  0x99   :  { %v314_v43 = vpop.permute.xlu1 %313  ;;  %v309_v44 = vpop.permute.xlu0 %308 }
  0x9d   :  { %v324_v45 = vpop.permute.xlu1 %323  ;;  %v319_v46 = vpop.permute.xlu0 %318 }
  0xa3   :  { %v334_v3 = vpop.permute.xlu1 %333  ;;  %v329_v4 = vpop.permute.xlu0 %328 }
  0xf5   :  { %v565_v47 = vpop.f32.mrb[0].mxu0  ;;  %v573_v48 = vpop.f32.mrb[0].mxu1 }
  0xf6   :  { %v177_v49 = vpop.f32.mrb[1].mxu0  ;;  %v209_v50 = vpop.f32.mrb[1].mxu1  ;;  %v338_v53 = vmul.f32 %v565_v47, %v269_v33  ;;  %v346_v54 = vmul.f32 %v573_v48, %v309_v44 }
  0xf7   :  { %v566_v51 = vpop.f32.mrb[2].mxu0  ;;  %v574_v52 = vpop.f32.mrb[2].mxu1  ;;  %v336_v59 = vmul.f32 %v259_v34, %v177_v49  ;;  %v344_v60 = vmul.f32 %v299_v42, %v209_v50 }
  0xf8   :  { %v339_v55 = vmul.f32 %v566_v51, %v274_v35  ;;  %v347_v56 = vmul.f32 %v574_v52, %v314_v43  ;;  %v180_v57 = vpop.f32.mrb[3].mxu0  ;;  %v212_v58 = vpop.f32.mrb[3].mxu1 }
  0xf9   :  { %v337_v61 = vmul.f32 %v264_v36, %v180_v57  ;;  %v345_v62 = vmul.f32 %v304_v41, %v212_v58 }
  0xfa   :  { %v492_v63 = vpack.c.bf16 %v339_v55, %v338_v53  ;;  %v512_v0 = vpack.c.bf16 %v347_v56, %v346_v54 }
  0xfb   :  { %v487_v1 = vpack.c.bf16 %v337_v61, %v336_v59  ;;  %v507_v2 = vpack.c.bf16 %v345_v62, %v344_v60 }
  0xfc   :  { %524 = vst [vmem:[%s758_s3 + $0x8] sm:$0xff] %v492_v63   ;;  %528 = vst [vmem:[%s758_s3 + $0x28] sm:$0xff] %v512_v0  }
  0xfd   :  { %488 = vst [vmem:[%s758_s3] sm:$0xff] %v487_v1   ;;  %527 = vst [vmem:[%s758_s3 + $0x20] sm:$0xff] %v507_v2   ;;  %v569_v5 = vpop.f32.mrb[4].mxu0  ;;  %v577_v6 = vpop.f32.mrb[4].mxu1 }
  0xfe   :  { %v193_v7 = vpop.f32.mrb[5].mxu0  ;;  %v225_v8 = vpop.f32.mrb[5].mxu1  ;;  %v342_v11 = vmul.f32 %v569_v5, %v289_v40  ;;  %v350_v12 = vmul.f32 %v577_v6, %v329_v4 }
  0xff   :  { %v570_v9 = vpop.f32.mrb[6].mxu0  ;;  %v578_v10 = vpop.f32.mrb[6].mxu1  ;;  %v340_v17 = vmul.f32 %v279_v38, %v193_v7  ;;  %v348_v18 = vmul.f32 %v319_v46, %v225_v8 }
 0x100   :  { %v343_v13 = vmul.f32 %v570_v9, %v294_v39  ;;  %v351_v14 = vmul.f32 %v578_v10, %v334_v3  ;;  %v196_v15 = vpop.f32.mrb[7].mxu0  ;;  %v228_v16 = vpop.f32.mrb[7].mxu1 }
 0x101   :  { %v341_v19 = vmul.f32 %v284_v37, %v196_v15  ;;  %v349_v20 = vmul.f32 %v324_v45, %v228_v16 }
 0x102   :  { %v502_v21 = vpack.c.bf16 %v343_v13, %v342_v11  ;;  %v522_v22 = vpack.c.bf16 %v351_v14, %v350_v12 }
 0x103   :  { %v497_v23 = vpack.c.bf16 %v341_v19, %v340_v17  ;;  %v517_v24 = vpack.c.bf16 %v349_v20, %v348_v18 }
 0x104   :  { %526 = vst [vmem:[%s758_s3 + $0x18] sm:$0xff] %v502_v21   ;;  %530 = vst [vmem:[%s758_s3 + $0x38] sm:$0xff] %v522_v22  }
 0x105   :  { %525 = vst [vmem:[%s758_s3 + $0x10] sm:$0xff] %v497_v23   ;;  %529 = vst [vmem:[%s758_s3 + $0x30] sm:$0xff] %v517_v24  }

// kernel: prost_nn_sparse_forward.4
= control target key start
LH: loop header
LB: loop body
LE: loop exit
PB: predicated region body
PF: predicated region fallthrough
CT: control target
= control target key end

     0   :  { %v1051_v0 = vmov 0.0   ;;  %s1274_s0 = inlined_call_operand.<no memory space> [shape: s32[1,1], index: 0, kind: input, shape index: {}]   ;;  %s1275_s1 = inlined_call_operand.<no memory space> [shape: s32[1], index: 1, kind: input, shape index: {}]   ;;  %s1276_s3 = inlined_call_operand.vmem [shape: bf16[128,128], index: 3, kind: input, shape index: {}]   ;;  %s1277_s4 = inlined_call_operand.vmem [shape: f32[128,1], index: 4, kind: input, shape index: {}]   ;;  %s1278_s5 = inlined_call_operand.vmem [shape: f32[1,128], index: 5, kind: input, shape index: {}]   ;;  %s1279_s6 = inlined_call_operand.vmem [shape: f32[1,128], index: 6, kind: input, shape index: {}]   ;;  %s1280_s7 = inlined_call_operand.vmem [shape: bf16[128,128], index: 7, kind: input, shape index: {}]   ;;  %s1281_s8 = inlined_call_operand.vmem [shape: bf16[128,128], index: 8, kind: output, shape index: {}]   ;;  %s1282_s2 = inlined_call_operand.vmem [shape: s8[128,128], index: 2, kind: input, shape index: {}]  }
   0x1   :  { %13 = sst [smem:[#allocation4]] %s1274_s0  ;;  %p51_p0 = scmp.lt.s32.totalorder %s1274_s0, 0  ;;  %64 = vst [vmem:[#allocation2] sm:$0xff] %v1051_v0  ;;  %65 = vst [vmem:[#allocation2 + $0x8] sm:$0xff] %v1051_v0 }
   0x2   :  { %66 = vst [vmem:[#allocation2 + $0x10] sm:$0xff] %v1051_v0  ;;  %67 = vst [vmem:[#allocation2 + $0x18] sm:$0xff] %v1051_v0  ;;  %p803_p1 = scmp.le.s32.totalorder %s1275_s1, 0 }
   0x3   :  { %68 = vst [vmem:[#allocation2 + $0x20] sm:$0xff] %v1051_v0  ;;  %69 = vst [vmem:[#allocation2 + $0x28] sm:$0xff] %v1051_v0  ;;  %s1284_s0 = smov (!%p51_p0, %s1274_s0), 0  ;;  %s88_s19 = sld [smem:[#allocation4]] (!%p803_p1) }
   0x4   :  { %70 = vst [vmem:[#allocation2 + $0x30] sm:$0xff] %v1051_v0  ;;  %71 = vst [vmem:[#allocation2 + $0x38] sm:$0xff] %v1051_v0  ;;  %s801_s13 = sshll.u32 %s1284_s0, 3  ;;  %84 = sbr.rel (%p803_p1) target bundleno = 272 (0x110), region = 33 }
   0x5   :  { %72 = vst [vmem:[#allocation2 + $0x40] sm:$0xff] %v1051_v0  ;;  %73 = vst [vmem:[#allocation2 + $0x48] sm:$0xff] %v1051_v0  ;;  %s1114_s16 = scalar_lea.vmem %s1282_s2, %s801_s13 }
   0x6   :  { %74 = vst [vmem:[#allocation2 + $0x50] sm:$0xff] %v1051_v0  ;;  %75 = vst [vmem:[#allocation2 + $0x58] sm:$0xff] %v1051_v0  ;;  %v126_v1 = vld [vmem:[%s1114_s16] sm:$0xff] (!%p803_p1)  ;;  %v128_v2 = vld [vmem:[%s1114_s16 + $0x10] sm:$0xff] (!%p803_p1) }
   0x7   :  { %76 = vst [vmem:[#allocation2 + $0x60] sm:$0xff] %v1051_v0  ;;  %77 = vst [vmem:[#allocation2 + $0x68] sm:$0xff] %v1051_v0  ;;  %v130_v3 = vunpack.c.l.s8.bf16 (!%p803_p1), %v126_v1  ;;  %v134_v4 = vunpack.c.l.s8.bf16 (!%p803_p1), %v128_v2  ;;  %v127_v13 = vld [vmem:[%s1114_s16 + $0x8] sm:$0xff] (!%p803_p1)  ;;  %v129_v14 = vld [vmem:[%s1114_s16 + $0x18] sm:$0xff] (!%p803_p1)  ;;  %v131_v15 = vunpack.c.h.s8.bf16 (!%p803_p1), %v126_v1  ;;  %v135_v16 = vunpack.c.h.s8.bf16 (!%p803_p1), %v128_v2 }
   0x8   :  { %78 = vst [vmem:[#allocation2 + $0x70] sm:$0xff] %v1051_v0  ;;  %79 = vst [vmem:[#allocation2 + $0x78] sm:$0xff] %v1051_v0  ;;  %v132_v17 = vunpack.c.l.s8.bf16 (!%p803_p1), %v127_v13  ;;  %v136_v18 = vunpack.c.l.s8.bf16 (!%p803_p1), %v129_v14  ;;  %v133_v19 = vunpack.c.h.s8.bf16 (!%p803_p1), %v127_v13  ;;  %v137_v20 = vunpack.c.h.s8.bf16 (!%p803_p1), %v129_v14  ;;  %v110_v23 = vld [vmem:[#allocation2] sm:$0xff] (!%p803_p1)  ;;  %v111_v33 = vld [vmem:[#allocation2 + $0x8] sm:$0xff] (!%p803_p1) }
   0x9   :  { %951 = vmatprep.mubr.bf16.mxu0 (!%p803_p1), %v130_v3  ;;  %959 = vmatprep.mubr.bf16.mxu1 (!%p803_p1), %v134_v4  ;;  %s804_s0 = sshll.u32 (!%p803_p1), %s88_s19, 7  ;;  %v112_v21 = vld [vmem:[#allocation2 + $0x10] sm:$0xff] (!%p803_p1)  ;;  %v113_v27 = vld [vmem:[#allocation2 + $0x18] sm:$0xff] (!%p803_p1) }
   0xa   :  { %s90_s20 = sshra.s32 (!%p803_p1), %s804_s0, 3  ;;  %v114_v47 = vld [vmem:[#allocation2 + $0x20] sm:$0xff] (!%p803_p1)  ;;  %v115_v57 = vld [vmem:[#allocation2 + $0x28] sm:$0xff] (!%p803_p1) }
   0xb   :  { %s805_s21 = sshll.u32 %s90_s20, 2  ;;  %v116_v45 = vld [vmem:[#allocation2 + $0x30] sm:$0xff]  ;;  %v117_v51 = vld [vmem:[#allocation2 + $0x38] sm:$0xff] }
   0xc   :  { %s1124_s23 = scalar_lea.vmem %s1276_s3, %s805_s21  ;;  %v118_v24 = vld [vmem:[#allocation2 + $0x40] sm:$0xff]  ;;  %v119_v34 = vld [vmem:[#allocation2 + $0x48] sm:$0xff] }
   0xd   :  { %v1033_v5 = vld [vmem:[%s1124_s23] sm:$0xff]   ;;  %v1034_v6 = vld [vmem:[%s1124_s23 + $0x8] sm:$0xff]   ;;  %v1035_v7 = vld [vmem:[%s1124_s23 + $0x10] sm:$0xff]  }
   0xe   :  { %935 = vmatprep.subr.bf16.mxu0 %v1033_v5  ;;  %999 = vmatprep.subr.bf16.mxu1 %v1033_v5  ;;  %v1036_v8 = vld [vmem:[%s1124_s23 + $0x18] sm:$0xff]   ;;  %v1037_v9 = vld [vmem:[%s1124_s23 + $0x20] sm:$0xff]   ;;  %v1038_v10 = vld [vmem:[%s1124_s23 + $0x28] sm:$0xff]  }
   0xf   :  { %936 = vmatpush3.bf16.msra.mxu0 %v1033_v5  ;;  %1007 = vmatpush3.bf16.msra.mxu1 %v1033_v5  ;;  %v1039_v11 = vld [vmem:[%s1124_s23 + $0x30] sm:$0xff]   ;;  %v1040_v12 = vld [vmem:[%s1124_s23 + $0x38] sm:$0xff]   ;;  %v122_v48 = vld [vmem:[#allocation2 + $0x60] sm:$0xff] }
  0x10   :  { %937 = vmatprep.subr.bf16.mxu0 %v1034_v6  ;;  %1000 = vmatprep.subr.bf16.mxu1 %v1034_v6  ;;  %v120_v22 = vld [vmem:[#allocation2 + $0x50] sm:$0xff]  ;;  %v121_v28 = vld [vmem:[#allocation2 + $0x58] sm:$0xff]  ;;  %v123_v58 = vld [vmem:[#allocation2 + $0x68] sm:$0xff] }
  0x11   :  { %v124_v46 = vld [vmem:[#allocation2 + $0x70] sm:$0xff]  ;;  %v125_v52 = vld [vmem:[#allocation2 + $0x78] sm:$0xff] }
  0x13   :  { %938 = vmatpush3.bf16.msra.mxu0 %v1034_v6  ;;  %1008 = vmatpush3.bf16.msra.mxu1 %v1034_v6 }
  0x14   :  { %939 = vmatprep.subr.bf16.mxu0 %v1035_v7  ;;  %1001 = vmatprep.subr.bf16.mxu1 %v1035_v7 }
  0x17   :  { %940 = vmatpush3.bf16.msra.mxu0 %v1035_v7  ;;  %1009 = vmatpush3.bf16.msra.mxu1 %v1035_v7 }
  0x18   :  { %941 = vmatprep.subr.bf16.mxu0 %v1036_v8  ;;  %1002 = vmatprep.subr.bf16.mxu1 %v1036_v8 }
  0x1b   :  { %942 = vmatpush3.bf16.msra.mxu0 %v1036_v8  ;;  %1010 = vmatpush3.bf16.msra.mxu1 %v1036_v8 }
  0x1c   :  { %943 = vmatprep.subr.bf16.mxu0 %v1037_v9  ;;  %1003 = vmatprep.subr.bf16.mxu1 %v1037_v9 }
  0x1f   :  { %944 = vmatpush3.bf16.msra.mxu0 %v1037_v9  ;;  %1011 = vmatpush3.bf16.msra.mxu1 %v1037_v9 }
  0x20   :  { %945 = vmatprep.subr.bf16.mxu0 %v1038_v10  ;;  %1004 = vmatprep.subr.bf16.mxu1 %v1038_v10 }
  0x23   :  { %946 = vmatpush3.bf16.msra.mxu0 %v1038_v10  ;;  %1012 = vmatpush3.bf16.msra.mxu1 %v1038_v10 }
  0x24   :  { %947 = vmatprep.subr.bf16.mxu0 %v1039_v11  ;;  %1005 = vmatprep.subr.bf16.mxu1 %v1039_v11 }
  0x27   :  { %948 = vmatpush3.bf16.msra.mxu0 %v1039_v11  ;;  %1013 = vmatpush3.bf16.msra.mxu1 %v1039_v11 }
  0x28   :  { %949 = vmatprep.subr.bf16.mxu0 %v1040_v12  ;;  %1006 = vmatprep.subr.bf16.mxu1 %v1040_v12 }
  0x2b   :  { %950 = vmatpush3.bf16.msra.mxu0 %v1040_v12  ;;  %1014 = vmatpush3.bf16.msra.mxu1 %v1040_v12 }
  0x2e   :  { %952 = vmatmul.mubr.bf16.vlgmr.msra.gmra.mrb[0].mxu0 %v131_v15  ;;  %960 = vmatmul.mubr.bf16.vlgmr.msra.gmra.mrb[0].mxu1 %v135_v16 }
  0x2f   :  { %955 = vmatprep.mubr.bf16.mxu0 %v132_v17  ;;  %963 = vmatprep.mubr.bf16.mxu1 %v136_v18 }
  0x36   :  { %956 = vmatmul.mubr.bf16.gmra.mrb[4].mxu0 %v133_v19  ;;  %964 = vmatmul.mubr.bf16.gmra.mrb[4].mxu1 %v137_v20 }
 0x101   :  { %v953_v25 = vpop.f32.mrb[0].mxu0  ;;  %v961_v26 = vpop.f32.mrb[0].mxu1 }
 0x102   :  { %v285_v29 = vadd.f32 %v953_v25, %v112_v21  ;;  %v293_v30 = vadd.f32 %v961_v26, %v120_v22  ;;  %v220_v31 = vpop.f32.mrb[1].mxu0  ;;  %v252_v32 = vpop.f32.mrb[1].mxu1 }
 0x103   :  { %v283_v35 = vadd.f32 %v220_v31, %v110_v23  ;;  %v291_v36 = vadd.f32 %v252_v32, %v118_v24  ;;  %v954_v37 = vpop.f32.mrb[2].mxu0  ;;  %v962_v38 = vpop.f32.mrb[2].mxu1 }
 0x104   :  { %301 = vst [vmem:[#allocation2 + $0x10] sm:$0xff] %v285_v29  ;;  %309 = vst [vmem:[#allocation2 + $0x50] sm:$0xff] %v293_v30  ;;  %v286_v39 = vadd.f32 %v954_v37, %v113_v27  ;;  %v294_v40 = vadd.f32 %v962_v38, %v121_v28  ;;  %v223_v41 = vpop.f32.mrb[3].mxu0  ;;  %v255_v42 = vpop.f32.mrb[3].mxu1 }
 0x105   :  { %299 = vst [vmem:[#allocation2] sm:$0xff] %v283_v35  ;;  %307 = vst [vmem:[#allocation2 + $0x40] sm:$0xff] %v291_v36  ;;  %v284_v43 = vadd.f32 %v223_v41, %v111_v33  ;;  %v292_v44 = vadd.f32 %v255_v42, %v119_v34 }
 0x106   :  { %302 = vst [vmem:[#allocation2 + $0x18] sm:$0xff] %v286_v39  ;;  %310 = vst [vmem:[#allocation2 + $0x58] sm:$0xff] %v294_v40 }
 0x107   :  { %300 = vst [vmem:[#allocation2 + $0x8] sm:$0xff] %v284_v43  ;;  %308 = vst [vmem:[#allocation2 + $0x48] sm:$0xff] %v292_v44 }
 0x109   :  { %v957_v49 = vpop.f32.mrb[4].mxu0  ;;  %v965_v50 = vpop.f32.mrb[4].mxu1 }
 0x10a   :  { %v289_v53 = vadd.f32 %v957_v49, %v116_v45  ;;  %v297_v54 = vadd.f32 %v965_v50, %v124_v46  ;;  %v236_v55 = vpop.f32.mrb[5].mxu0  ;;  %v268_v56 = vpop.f32.mrb[5].mxu1 }
 0x10b   :  { %v287_v59 = vadd.f32 %v236_v55, %v114_v47  ;;  %v295_v60 = vadd.f32 %v268_v56, %v122_v48  ;;  %v958_v61 = vpop.f32.mrb[6].mxu0  ;;  %v966_v62 = vpop.f32.mrb[6].mxu1 }
 0x10c   :  { %305 = vst [vmem:[#allocation2 + $0x30] sm:$0xff] %v289_v53  ;;  %313 = vst [vmem:[#allocation2 + $0x70] sm:$0xff] %v297_v54  ;;  %v290_v63 = vadd.f32 %v958_v61, %v117_v51  ;;  %v298_v0 = vadd.f32 %v966_v62, %v125_v52  ;;  %v239_v1 = vpop.f32.mrb[7].mxu0  ;;  %v271_v2 = vpop.f32.mrb[7].mxu1 }
 0x10d   :  { %303 = vst [vmem:[#allocation2 + $0x20] sm:$0xff] %v287_v59  ;;  %311 = vst [vmem:[#allocation2 + $0x60] sm:$0xff] %v295_v60  ;;  %v288_v3 = vadd.f32 %v239_v1, %v115_v57  ;;  %v296_v4 = vadd.f32 %v271_v2, %v123_v58 }
 0x10e   :  { %306 = vst [vmem:[#allocation2 + $0x38] sm:$0xff] %v290_v63  ;;  %314 = vst [vmem:[#allocation2 + $0x78] sm:$0xff] %v298_v0 }
 0x10f   :  { %304 = vst [vmem:[#allocation2 + $0x28] sm:$0xff] %v288_v3  ;;  %312 = vst [vmem:[#allocation2 + $0x68] sm:$0xff] %v296_v4 }
 0x110 PF:  { %v342_v5 = vld [vmem:[%s1277_s4 + $0x40] sm:$0xff]  ;;  %v1052_v7 = vmov 0   ;;  %v343_v8 = vld [vmem:[%s1277_s4 + $0x48] sm:$0xff]  ;;  %v337_v10 = vld [vmem:[%s1277_s4 + $0x18] sm:$0xff] }
 0x111   :  { %v334_v6 = vld [vmem:[%s1277_s4] sm:$0xff]  ;;  %1042 = vset.pattern.permute.xlu1 %v1052_v7  ;;  %1041 = vset.pattern.permute.xlu0 %v1052_v7  ;;  %v335_v9 = vld [vmem:[%s1277_s4 + $0x8] sm:$0xff]  ;;  %v336_v11 = vld [vmem:[%s1277_s4 + $0x10] sm:$0xff] }
 0x112   :  { %392 = vperm.xlu1 %1042, %v342_v5   ;;  %352 = vperm.xlu0 %1041, %v334_v6   ;;  %v1043_v12 = vld [vmem:[%s1280_s7] sm:$0xff]   ;;  %v1044_v13 = vld [vmem:[%s1280_s7 + $0x8] sm:$0xff]   ;;  %v345_v14 = vld [vmem:[%s1277_s4 + $0x58] sm:$0xff] }
 0x113   :  { %967 = vmatprep.subr.bf16.mxu0 %v1043_v12  ;;  %1015 = vmatprep.subr.bf16.mxu1 %v1043_v12  ;;  %v344_v15 = vld [vmem:[%s1277_s4 + $0x50] sm:$0xff]  ;;  %v339_v17 = vld [vmem:[%s1277_s4 + $0x28] sm:$0xff]  ;;  %v338_v18 = vld [vmem:[%s1277_s4 + $0x20] sm:$0xff] }
 0x114   :  { %968 = vmatpush3.bf16.msra.mxu0 %v1043_v12  ;;  %1023 = vmatpush3.bf16.msra.mxu1 %v1043_v12  ;;  %v1045_v16 = vld [vmem:[%s1280_s7 + $0x10] sm:$0xff]   ;;  %v1046_v19 = vld [vmem:[%s1280_s7 + $0x18] sm:$0xff]   ;;  %v347_v20 = vld [vmem:[%s1277_s4 + $0x68] sm:$0xff] }
 0x115   :  { %969 = vmatprep.subr.bf16.mxu0 %v1044_v13  ;;  %1016 = vmatprep.subr.bf16.mxu1 %v1044_v13  ;;  %v346_v21 = vld [vmem:[%s1277_s4 + $0x60] sm:$0xff]  ;;  %v341_v23 = vld [vmem:[%s1277_s4 + $0x38] sm:$0xff]  ;;  %v340_v24 = vld [vmem:[%s1277_s4 + $0x30] sm:$0xff] }
 0x116   :  { %397 = vperm.xlu1 %1042, %v343_v8   ;;  %357 = vperm.xlu0 %1041, %v335_v9   ;;  %v1047_v22 = vld [vmem:[%s1280_s7 + $0x20] sm:$0xff]   ;;  %v1048_v25 = vld [vmem:[%s1280_s7 + $0x28] sm:$0xff]   ;;  %v349_v26 = vld [vmem:[%s1277_s4 + $0x78] sm:$0xff] }
 0x117   :  { %v348_v27 = vld [vmem:[%s1277_s4 + $0x70] sm:$0xff]  ;;  %v1050_v29 = vld [vmem:[%s1280_s7 + $0x38] sm:$0xff]   ;;  %v326_v30 = vld [vmem:[#allocation2 + $0x40] sm:$0xff] }
 0x118   :  { %970 = vmatpush3.bf16.msra.mxu0 %v1044_v13  ;;  %1024 = vmatpush3.bf16.msra.mxu1 %v1044_v13  ;;  %v1049_v28 = vld [vmem:[%s1280_s7 + $0x30] sm:$0xff]   ;;  %v318_v31 = vld [vmem:[#allocation2] sm:$0xff]  ;;  %v327_v40 = vld [vmem:[#allocation2 + $0x48] sm:$0xff] }
 0x119   :  { %971 = vmatprep.subr.bf16.mxu0 %v1045_v16  ;;  %1017 = vmatprep.subr.bf16.mxu1 %v1045_v16  ;;  %v1211_v32 = vld [vmem:[%s1278_s5] ss:$0 sm:$0xff]  ;;  %v319_v41 = vld [vmem:[#allocation2 + $0x8] sm:$0xff]  ;;  %v321_v48 = vld [vmem:[#allocation2 + $0x18] sm:$0xff] }
 0x11a   :  { %367 = vperm.xlu1 %1042, %v337_v10   ;;  %362 = vperm.xlu0 %1041, %v336_v11   ;;  %v1216_v37 = vld [vmem:[%s1279_s6] ss:$0 sm:$0xff]  ;;  %v320_v49 = vld [vmem:[#allocation2 + $0x10] sm:$0xff]  ;;  %v329_v62 = vld [vmem:[#allocation2 + $0x58] sm:$0xff] }
 0x11b   :  { %v328_v63 = vld [vmem:[#allocation2 + $0x50] sm:$0xff]  ;;  %v323_v12 = vld [vmem:[#allocation2 + $0x28] sm:$0xff]  ;;  %v322_v13 = vld [vmem:[#allocation2 + $0x20] sm:$0xff] }
 0x11c   :  { %972 = vmatpush3.bf16.msra.mxu0 %v1045_v16  ;;  %1025 = vmatpush3.bf16.msra.mxu1 %v1045_v16 }
 0x11d   :  { %973 = vmatprep.subr.bf16.mxu0 %v1046_v19  ;;  %1018 = vmatprep.subr.bf16.mxu1 %v1046_v19 }
 0x11e   :  { %407 = vperm.xlu1 %1042, %v345_v14   ;;  %402 = vperm.xlu0 %1041, %v344_v15  }
 0x120   :  { %974 = vmatpush3.bf16.msra.mxu0 %v1046_v19  ;;  %1026 = vmatpush3.bf16.msra.mxu1 %v1046_v19 }
 0x121   :  { %975 = vmatprep.subr.bf16.mxu0 %v1047_v22  ;;  %1019 = vmatprep.subr.bf16.mxu1 %v1047_v22 }
 0x122   :  { %377 = vperm.xlu1 %1042, %v339_v17   ;;  %372 = vperm.xlu0 %1041, %v338_v18  }
 0x124   :  { %976 = vmatpush3.bf16.msra.mxu0 %v1047_v22  ;;  %1027 = vmatpush3.bf16.msra.mxu1 %v1047_v22 }
 0x125   :  { %977 = vmatprep.subr.bf16.mxu0 %v1048_v25  ;;  %1020 = vmatprep.subr.bf16.mxu1 %v1048_v25 }
 0x126   :  { %417 = vperm.xlu1 %1042, %v347_v20   ;;  %412 = vperm.xlu0 %1041, %v346_v21  }
 0x128   :  { %978 = vmatpush3.bf16.msra.mxu0 %v1048_v25  ;;  %1028 = vmatpush3.bf16.msra.mxu1 %v1048_v25 }
 0x129   :  { %979 = vmatprep.subr.bf16.mxu0 %v1049_v28  ;;  %1021 = vmatprep.subr.bf16.mxu1 %v1049_v28 }
 0x12a   :  { %387 = vperm.xlu1 %1042, %v341_v23   ;;  %382 = vperm.xlu0 %1041, %v340_v24  }
 0x12c   :  { %980 = vmatpush3.bf16.msra.mxu0 %v1049_v28  ;;  %1029 = vmatpush3.bf16.msra.mxu1 %v1049_v28 }
 0x12d   :  { %981 = vmatprep.subr.bf16.mxu0 %v1050_v29  ;;  %1022 = vmatprep.subr.bf16.mxu1 %v1050_v29 }
 0x12e   :  { %427 = vperm.xlu1 %1042, %v349_v26   ;;  %422 = vperm.xlu0 %1041, %v348_v27  }
 0x130   :  { %982 = vmatpush3.bf16.msra.mxu0 %v1050_v29  ;;  %1030 = vmatpush3.bf16.msra.mxu1 %v1050_v29 }
 0x191   :  { %v393_v33 = vpop.permute.xlu1 %392  ;;  %v353_v34 = vpop.permute.xlu0 %352 }
 0x192   :  { %v438_v35 = vmul.f32 %v393_v33, %v326_v30  ;;  %v430_v36 = vmul.f32 %v353_v34, %v318_v31  ;;  %v331_v31 = vld [vmem:[#allocation2 + $0x68] sm:$0xff] }
 0x194   :  { %v461_v38 = vadd.f32 %v1211_v32, %v438_v35  ;;  %v453_v39 = vadd.f32 %v1211_v32, %v430_v36 }
 0x195   :  { %v398_v42 = vpop.permute.xlu1 %397  ;;  %v358_v43 = vpop.permute.xlu0 %357 }
 0x196   :  { %v500_v44 = vmul.f32 %v1216_v37, %v461_v38  ;;  %v492_v45 = vmul.f32 %v1216_v37, %v453_v39  ;;  %vm477_vm0 = vcmp.gt.f32.partialorder %v461_v38, 0.0  ;;  %vm469_vm1 = vcmp.gt.f32.partialorder %v453_v39, 0.0 }
 0x197   :  { %v439_v46 = vmul.f32 %v398_v42, %v327_v40  ;;  %v431_v47 = vmul.f32 %v358_v43, %v319_v41 }
 0x198   :  { %v516_v54 = vsel %vm477_vm0, %v461_v38, %v500_v44  ;;  %v508_v55 = vsel %vm469_vm1, %v453_v39, %v492_v45  ;;  %v325_v45 = vld [vmem:[#allocation2 + $0x38] sm:$0xff] }
 0x199   :  { %v462_v50 = vadd.f32 %v1211_v32, %v439_v46  ;;  %v454_v51 = vadd.f32 %v1211_v32, %v431_v47  ;;  %v368_v52 = vpop.permute.xlu1 %367  ;;  %v363_v53 = vpop.permute.xlu0 %362  ;;  %v532_v0 = vmul.f32 %v516_v54, %v393_v33  ;;  %v524_v1 = vmul.f32 %v508_v55, %v353_v34  ;;  %v330_v33 = vld [vmem:[#allocation2 + $0x60] sm:$0xff]  ;;  %v324_v46 = vld [vmem:[#allocation2 + $0x30] sm:$0xff] }
 0x19a   :  { %v433_v56 = vmul.f32 %v368_v52, %v321_v48  ;;  %v432_v57 = vmul.f32 %v363_v53, %v320_v49 }
 0x19b   :  { %vm478_vm2 = vcmp.gt.f32.partialorder %v462_v50, 0.0  ;;  %v501_v58 = vmul.f32 %v1216_v37, %v462_v50  ;;  %vm470_vm3 = vcmp.gt.f32.partialorder %v454_v51, 0.0  ;;  %v493_v59 = vmul.f32 %v1216_v37, %v454_v51 }
 0x19c   :  { %v456_v60 = vadd.f32 %v1211_v32, %v433_v56  ;;  %v455_v61 = vadd.f32 %v1211_v32, %v432_v57 }
 0x19d   :  { %v517_v2 = vsel %vm478_vm2, %v462_v50, %v501_v58  ;;  %v509_v3 = vsel %vm470_vm3, %v454_v51, %v493_v59  ;;  %v408_v4 = vpop.permute.xlu1 %407  ;;  %v403_v5 = vpop.permute.xlu0 %402 }
 0x19e   :  { %v533_v6 = vmul.f32 %v517_v2, %v398_v42  ;;  %v525_v7 = vmul.f32 %v509_v3, %v358_v43  ;;  %vm472_vm4 = vcmp.gt.f32.partialorder %v456_v60, 0.0  ;;  %v495_v8 = vmul.f32 %v1216_v37, %v456_v60 }
 0x19f   :  { %vm471_vm5 = vcmp.gt.f32.partialorder %v455_v61, 0.0  ;;  %v494_v9 = vmul.f32 %v1216_v37, %v455_v61  ;;  %v441_v10 = vmul.f32 %v408_v4, %v329_v62  ;;  %v440_v11 = vmul.f32 %v403_v5, %v328_v63  ;;  %v333_v63 = vld [vmem:[#allocation2 + $0x78] sm:$0xff] }
 0x1a0   :  { %v511_v14 = vsel %vm472_vm4, %v456_v60, %v495_v8  ;;  %v540_v15 = vpack.c.bf16 %v525_v7, %v524_v1  ;;  %v544_v16 = vpack.c.bf16 %v533_v6, %v532_v0  ;;  %v332_v0 = vld [vmem:[#allocation2 + $0x70] sm:$0xff] }
 0x1a1   :  { %v527_v17 = vmul.f32 %v511_v14, %v368_v52  ;;  %v510_v18 = vsel %vm471_vm5, %v455_v61, %v494_v9  ;;  %v464_v19 = vadd.f32 %v1211_v32, %v441_v10  ;;  %v463_v20 = vadd.f32 %v1211_v32, %v440_v11  ;;  %v378_v21 = vpop.permute.xlu1 %377  ;;  %v373_v22 = vpop.permute.xlu0 %372 }
 0x1a2   :  { %v526_v23 = vmul.f32 %v510_v18, %v363_v53  ;;  %v435_v24 = vmul.f32 %v378_v21, %v323_v12  ;;  %v434_v25 = vmul.f32 %v373_v22, %v322_v13  ;;  %983 = vmatprep.mubr.bf16.mxu0 %v540_v15  ;;  %991 = vmatprep.mubr.bf16.mxu1 %v544_v16 }
 0x1a3   :  { %vm480_vm6 = vcmp.gt.f32.partialorder %v464_v19, 0.0  ;;  %v503_v26 = vmul.f32 %v1216_v37, %v464_v19  ;;  %vm479_vm7 = vcmp.gt.f32.partialorder %v463_v20, 0.0  ;;  %v502_v27 = vmul.f32 %v1216_v37, %v463_v20 }
 0x1a4   :  { %v541_v28 = vpack.c.bf16 %v527_v17, %v526_v23  ;;  %v458_v29 = vadd.f32 %v1211_v32, %v435_v24  ;;  %v457_v30 = vadd.f32 %v1211_v32, %v434_v25 }
 0x1a5   :  { %v519_v34 = vsel %vm480_vm6, %v464_v19, %v503_v26  ;;  %v518_v35 = vsel %vm479_vm7, %v463_v20, %v502_v27  ;;  %v418_v36 = vpop.permute.xlu1 %417  ;;  %v413_v38 = vpop.permute.xlu0 %412 }
 0x1a6   :  { %v535_v39 = vmul.f32 %v519_v34, %v408_v4  ;;  %v534_v40 = vmul.f32 %v518_v35, %v403_v5  ;;  %vm474_vm8 = vcmp.gt.f32.partialorder %v458_v29, 0.0  ;;  %v497_v41 = vmul.f32 %v1216_v37, %v458_v29  ;;  %984 = vmatmul.mubr.bf16.vlgmr.msra.gmra.mrb[0].mxu0 %v541_v28 }
 0x1a7   :  { %vm473_vm9 = vcmp.gt.f32.partialorder %v457_v30, 0.0  ;;  %v496_v42 = vmul.f32 %v1216_v37, %v457_v30  ;;  %v443_v43 = vmul.f32 %v418_v36, %v331_v31  ;;  %v442_v44 = vmul.f32 %v413_v38, %v330_v33 }
 0x1a8   :  { %v545_v47 = vpack.c.bf16 %v535_v39, %v534_v40  ;;  %v513_v48 = vsel %vm474_vm8, %v458_v29, %v497_v41 }
 0x1a9   :  { %v529_v49 = vmul.f32 %v513_v48, %v378_v21  ;;  %v512_v50 = vsel %vm473_vm9, %v457_v30, %v496_v42  ;;  %v466_v51 = vadd.f32 %v1211_v32, %v443_v43  ;;  %v465_v52 = vadd.f32 %v1211_v32, %v442_v44  ;;  %v388_v53 = vpop.permute.xlu1 %387  ;;  %v383_v54 = vpop.permute.xlu0 %382 }
 0x1aa   :  { %v528_v55 = vmul.f32 %v512_v50, %v373_v22  ;;  %v437_v56 = vmul.f32 %v388_v53, %v325_v45  ;;  %v436_v57 = vmul.f32 %v383_v54, %v324_v46  ;;  %992 = vmatmul.mubr.bf16.vlgmr.msra.gmra.mrb[0].mxu1 %v545_v47 }
 0x1ab   :  { %vm482_vm10 = vcmp.gt.f32.partialorder %v466_v51, 0.0  ;;  %v505_v58 = vmul.f32 %v1216_v37, %v466_v51  ;;  %vm481_vm11 = vcmp.gt.f32.partialorder %v465_v52, 0.0  ;;  %v504_v59 = vmul.f32 %v1216_v37, %v465_v52 }
 0x1ac   :  { %v542_v60 = vpack.c.bf16 %v529_v49, %v528_v55  ;;  %v460_v61 = vadd.f32 %v1211_v32, %v437_v56  ;;  %v459_v62 = vadd.f32 %v1211_v32, %v436_v57 }
 0x1ad   :  { %v521_v1 = vsel %vm482_vm10, %v466_v51, %v505_v58  ;;  %v520_v2 = vsel %vm481_vm11, %v465_v52, %v504_v59  ;;  %v428_v3 = vpop.permute.xlu1 %427  ;;  %v423_v4 = vpop.permute.xlu0 %422 }
 0x1ae   :  { %v537_v5 = vmul.f32 %v521_v1, %v418_v36  ;;  %v536_v6 = vmul.f32 %v520_v2, %v413_v38  ;;  %vm476_vm12 = vcmp.gt.f32.partialorder %v460_v61, 0.0  ;;  %v499_v7 = vmul.f32 %v1216_v37, %v460_v61  ;;  %987 = vmatprep.mubr.bf16.mxu0 %v542_v60 }
 0x1af   :  { %vm475_vm13 = vcmp.gt.f32.partialorder %v459_v62, 0.0  ;;  %v498_v8 = vmul.f32 %v1216_v37, %v459_v62  ;;  %v445_v9 = vmul.f32 %v428_v3, %v333_v63  ;;  %v444_v10 = vmul.f32 %v423_v4, %v332_v0 }
 0x1b0   :  { %v546_v11 = vpack.c.bf16 %v537_v5, %v536_v6  ;;  %v515_v12 = vsel %vm476_vm12, %v460_v61, %v499_v7 }
 0x1b1   :  { %v531_v13 = vmul.f32 %v515_v12, %v388_v53  ;;  %v514_v14 = vsel %vm475_vm13, %v459_v62, %v498_v8  ;;  %v468_v15 = vadd.f32 %v1211_v32, %v445_v9  ;;  %v467_v16 = vadd.f32 %v1211_v32, %v444_v10 }
 0x1b2   :  { %v530_v17 = vmul.f32 %v514_v14, %v383_v54  ;;  %995 = vmatprep.mubr.bf16.mxu1 %v546_v11 }
 0x1b3   :  { %vm484_vm14 = vcmp.gt.f32.partialorder %v468_v15, 0.0  ;;  %v507_v18 = vmul.f32 %v1216_v37, %v468_v15  ;;  %vm483_vm15 = vcmp.gt.f32.partialorder %v467_v16, 0.0  ;;  %v506_v19 = vmul.f32 %v1216_v37, %v467_v16 }
 0x1b4   :  { %v543_v20 = vpack.c.bf16 %v531_v13, %v530_v17 }
 0x1b5   :  { %v523_v21 = vsel %vm484_vm14, %v468_v15, %v507_v18  ;;  %v522_v22 = vsel %vm483_vm15, %v467_v16, %v506_v19 }
 0x1b6   :  { %v539_v23 = vmul.f32 %v523_v21, %v428_v3  ;;  %v538_v24 = vmul.f32 %v522_v22, %v423_v4  ;;  %988 = vmatmul.mubr.bf16.gmra.mrb[4].mxu0 %v543_v20 }
 0x1b8   :  { %v547_v25 = vpack.c.bf16 %v539_v23, %v538_v24 }
 0x1ba   :  { %996 = vmatmul.mubr.bf16.gmra.mrb[4].mxu1 %v547_v25 }
 0x279   :  { %v985_v26 = vpop.f32.mrb[0].mxu0 }
 0x27a   :  { %v646_v27 = vpop.f32.mrb[1].mxu0 }
 0x27b   :  { %v986_v28 = vpop.f32.mrb[2].mxu0 }
 0x27c   :  { %v864_v32 = vpack.c.bf16 %v986_v28, %v985_v26  ;;  %v649_v29 = vpop.f32.mrb[3].mxu0 }
 0x27d   :  { %v859_v30 = vpack.c.bf16 %v649_v29, %v646_v27  ;;  %v993_v31 = vpop.f32.mrb[0].mxu1 }
 0x27e   :  { %896 = vst [vmem:[%s1281_s8 + $0x8] sm:$0xff] %v864_v32   ;;  %v678_v37 = vpop.f32.mrb[1].mxu1 }
 0x27f   :  { %860 = vst [vmem:[%s1281_s8] sm:$0xff] %v859_v30   ;;  %v994_v33 = vpop.f32.mrb[2].mxu1 }
 0x280   :  { %v884_v34 = vpack.c.bf16 %v994_v33, %v993_v31  ;;  %v681_v35 = vpop.f32.mrb[3].mxu1 }
 0x281   :  { %v879_v36 = vpack.c.bf16 %v681_v35, %v678_v37 }
 0x282   :  { %900 = vst [vmem:[%s1281_s8 + $0x28] sm:$0xff] %v884_v34  }
 0x283   :  { %899 = vst [vmem:[%s1281_s8 + $0x20] sm:$0xff] %v879_v36  }
 0x289   :  { %v989_v38 = vpop.f32.mrb[4].mxu0 }
 0x28a   :  { %v662_v39 = vpop.f32.mrb[5].mxu0 }
 0x28b   :  { %v990_v40 = vpop.f32.mrb[6].mxu0 }
 0x28c   :  { %v874_v41 = vpack.c.bf16 %v990_v40, %v989_v38  ;;  %v665_v42 = vpop.f32.mrb[7].mxu0 }
 0x28d   :  { %v869_v43 = vpack.c.bf16 %v665_v42, %v662_v39  ;;  %v997_v44 = vpop.f32.mrb[4].mxu1 }
 0x28e   :  { %898 = vst [vmem:[%s1281_s8 + $0x18] sm:$0xff] %v874_v41   ;;  %v694_v45 = vpop.f32.mrb[5].mxu1 }
 0x28f   :  { %897 = vst [vmem:[%s1281_s8 + $0x10] sm:$0xff] %v869_v43   ;;  %v998_v46 = vpop.f32.mrb[6].mxu1 }
 0x290   :  { %v894_v47 = vpack.c.bf16 %v998_v46, %v997_v44  ;;  %v697_v48 = vpop.f32.mrb[7].mxu1 }
 0x291   :  { %v889_v49 = vpack.c.bf16 %v697_v48, %v694_v45 }
 0x292   :  { %902 = vst [vmem:[%s1281_s8 + $0x38] sm:$0xff] %v894_v47  }
 0x293   :  { %901 = vst [vmem:[%s1281_s8 + $0x30] sm:$0xff] %v889_v49  }

// kernel: prost_nn_sparse_forward.5
= control target key start
LH: loop header
LB: loop body
LE: loop exit
PB: predicated region body
PF: predicated region fallthrough
CT: control target
= control target key end

     0   :  { %v1480_v0 = vmov 0.0   ;;  %s2162_s0 = inlined_call_operand.<no memory space> [shape: s32[1,1], index: 0, kind: input, shape index: {}]   ;;  %s2163_s1 = inlined_call_operand.<no memory space> [shape: s32[1], index: 1, kind: input, shape index: {}]   ;;  %s2164_s3 = inlined_call_operand.vmem [shape: bf16[128,128], index: 3, kind: input, shape index: {}]   ;;  %s2165_s4 = inlined_call_operand.vmem [shape: f32[128,1], index: 4, kind: input, shape index: {}]   ;;  %s2166_s5 = inlined_call_operand.vmem [shape: f32[1,128], index: 5, kind: input, shape index: {}]   ;;  %s2167_s6 = inlined_call_operand.vmem [shape: f32[1,128], index: 6, kind: input, shape index: {}]   ;;  %s2168_s7 = inlined_call_operand.vmem [shape: f32[128,128], index: 7, kind: input, shape index: {}]   ;;  %s2169_s8 = inlined_call_operand.vmem [shape: f32[1,128], index: 8, kind: input, shape index: {}]   ;;  %s2170_s9 = inlined_call_operand.vmem [shape: f32[1,128], index: 9, kind: input, shape index: {}]   ;;  %s2171_s10 = inlined_call_operand.vmem [shape: f32[128,128], index: 10, kind: output, shape index: {0}]   ;;  %s2172_s11 = inlined_call_operand.vmem [shape: f32[128,128], index: 11, kind: output, shape index: {1}]   ;;  %s2173_s2 = inlined_call_operand.vmem [shape: s8[128,128], index: 2, kind: input, shape index: {}]  }
   0x1   :  { %17 = sst [smem:[#allocation4]] %s2162_s0  ;;  %p59_p0 = scmp.lt.s32.totalorder %s2162_s0, 0  ;;  %72 = vst [vmem:[#allocation2] sm:$0xff] %v1480_v0  ;;  %73 = vst [vmem:[#allocation2 + $0x8] sm:$0xff] %v1480_v0 }
   0x2   :  { %74 = vst [vmem:[#allocation2 + $0x10] sm:$0xff] %v1480_v0  ;;  %75 = vst [vmem:[#allocation2 + $0x18] sm:$0xff] %v1480_v0  ;;  %p1157_p1 = scmp.le.s32.totalorder %s2163_s1, 0 }
   0x3   :  { %76 = vst [vmem:[#allocation2 + $0x20] sm:$0xff] %v1480_v0  ;;  %77 = vst [vmem:[#allocation2 + $0x28] sm:$0xff] %v1480_v0  ;;  %s2175_s0 = smov (!%p59_p0, %s2162_s0), 0  ;;  %s96_s12 = sld [smem:[#allocation4]] (!%p1157_p1) }
   0x4   :  { %78 = vst [vmem:[#allocation2 + $0x30] sm:$0xff] %v1480_v0  ;;  %79 = vst [vmem:[#allocation2 + $0x38] sm:$0xff] %v1480_v0  ;;  %s1155_s25 = sshll.u32 %s2175_s0, 3  ;;  %92 = sbr.rel (%p1157_p1) target bundleno = 272 (0x110), region = 41 }
   0x5   :  { %80 = vst [vmem:[#allocation2 + $0x40] sm:$0xff] %v1480_v0  ;;  %81 = vst [vmem:[#allocation2 + $0x48] sm:$0xff] %v1480_v0  ;;  %s1558_s28 = scalar_lea.vmem %s2173_s2, %s1155_s25 }
   0x6   :  { %82 = vst [vmem:[#allocation2 + $0x50] sm:$0xff] %v1480_v0  ;;  %83 = vst [vmem:[#allocation2 + $0x58] sm:$0xff] %v1480_v0  ;;  %v134_v1 = vld [vmem:[%s1558_s28] sm:$0xff] (!%p1157_p1)  ;;  %v136_v2 = vld [vmem:[%s1558_s28 + $0x10] sm:$0xff] (!%p1157_p1) }
   0x7   :  { %84 = vst [vmem:[#allocation2 + $0x60] sm:$0xff] %v1480_v0  ;;  %85 = vst [vmem:[#allocation2 + $0x68] sm:$0xff] %v1480_v0  ;;  %v138_v3 = vunpack.c.l.s8.bf16 (!%p1157_p1), %v134_v1  ;;  %v142_v4 = vunpack.c.l.s8.bf16 (!%p1157_p1), %v136_v2  ;;  %v135_v13 = vld [vmem:[%s1558_s28 + $0x8] sm:$0xff] (!%p1157_p1)  ;;  %v137_v14 = vld [vmem:[%s1558_s28 + $0x18] sm:$0xff] (!%p1157_p1)  ;;  %v139_v15 = vunpack.c.h.s8.bf16 (!%p1157_p1), %v134_v1  ;;  %v143_v16 = vunpack.c.h.s8.bf16 (!%p1157_p1), %v136_v2 }
   0x8   :  { %86 = vst [vmem:[#allocation2 + $0x70] sm:$0xff] %v1480_v0  ;;  %87 = vst [vmem:[#allocation2 + $0x78] sm:$0xff] %v1480_v0  ;;  %v140_v17 = vunpack.c.l.s8.bf16 (!%p1157_p1), %v135_v13  ;;  %v144_v18 = vunpack.c.l.s8.bf16 (!%p1157_p1), %v137_v14  ;;  %v141_v19 = vunpack.c.h.s8.bf16 (!%p1157_p1), %v135_v13  ;;  %v145_v20 = vunpack.c.h.s8.bf16 (!%p1157_p1), %v137_v14  ;;  %v118_v23 = vld [vmem:[#allocation2] sm:$0xff] (!%p1157_p1)  ;;  %v119_v33 = vld [vmem:[#allocation2 + $0x8] sm:$0xff] (!%p1157_p1) }
   0x9   :  { %1236 = vmatprep.mubr.bf16.mxu0 (!%p1157_p1), %v138_v3  ;;  %1244 = vmatprep.mubr.bf16.mxu1 (!%p1157_p1), %v142_v4  ;;  %s1158_s0 = sshll.u32 (!%p1157_p1), %s96_s12, 7  ;;  %v120_v21 = vld [vmem:[#allocation2 + $0x10] sm:$0xff] (!%p1157_p1)  ;;  %v121_v27 = vld [vmem:[#allocation2 + $0x18] sm:$0xff] (!%p1157_p1) }
   0xa   :  { %s98_s13 = sshra.s32 (!%p1157_p1), %s1158_s0, 3  ;;  %v122_v47 = vld [vmem:[#allocation2 + $0x20] sm:$0xff] (!%p1157_p1)  ;;  %v123_v57 = vld [vmem:[#allocation2 + $0x28] sm:$0xff] (!%p1157_p1) }
   0xb   :  { %s1159_s14 = sshll.u32 %s98_s13, 2  ;;  %v124_v45 = vld [vmem:[#allocation2 + $0x30] sm:$0xff]  ;;  %v125_v51 = vld [vmem:[#allocation2 + $0x38] sm:$0xff] }
   0xc   :  { %s1568_s16 = scalar_lea.vmem %s2164_s3, %s1159_s14  ;;  %v126_v24 = vld [vmem:[#allocation2 + $0x40] sm:$0xff]  ;;  %v127_v34 = vld [vmem:[#allocation2 + $0x48] sm:$0xff] }
   0xd   :  { %v1374_v5 = vld [vmem:[%s1568_s16] sm:$0xff]   ;;  %v1375_v6 = vld [vmem:[%s1568_s16 + $0x8] sm:$0xff]   ;;  %v1376_v7 = vld [vmem:[%s1568_s16 + $0x10] sm:$0xff]  }
   0xe   :  { %1220 = vmatprep.subr.bf16.mxu0 %v1374_v5  ;;  %1340 = vmatprep.subr.bf16.mxu1 %v1374_v5  ;;  %v1377_v8 = vld [vmem:[%s1568_s16 + $0x18] sm:$0xff]   ;;  %v1378_v9 = vld [vmem:[%s1568_s16 + $0x20] sm:$0xff]   ;;  %v1379_v10 = vld [vmem:[%s1568_s16 + $0x28] sm:$0xff]  }
   0xf   :  { %1221 = vmatpush3.bf16.msra.mxu0 %v1374_v5  ;;  %1348 = vmatpush3.bf16.msra.mxu1 %v1374_v5  ;;  %v1380_v11 = vld [vmem:[%s1568_s16 + $0x30] sm:$0xff]   ;;  %v1381_v12 = vld [vmem:[%s1568_s16 + $0x38] sm:$0xff]   ;;  %v130_v48 = vld [vmem:[#allocation2 + $0x60] sm:$0xff] }
  0x10   :  { %1222 = vmatprep.subr.bf16.mxu0 %v1375_v6  ;;  %1341 = vmatprep.subr.bf16.mxu1 %v1375_v6  ;;  %v128_v22 = vld [vmem:[#allocation2 + $0x50] sm:$0xff]  ;;  %v129_v28 = vld [vmem:[#allocation2 + $0x58] sm:$0xff]  ;;  %v131_v58 = vld [vmem:[#allocation2 + $0x68] sm:$0xff] }
  0x11   :  { %v132_v46 = vld [vmem:[#allocation2 + $0x70] sm:$0xff]  ;;  %v133_v52 = vld [vmem:[#allocation2 + $0x78] sm:$0xff] }
  0x13   :  { %1223 = vmatpush3.bf16.msra.mxu0 %v1375_v6  ;;  %1349 = vmatpush3.bf16.msra.mxu1 %v1375_v6 }
  0x14   :  { %1224 = vmatprep.subr.bf16.mxu0 %v1376_v7  ;;  %1342 = vmatprep.subr.bf16.mxu1 %v1376_v7 }
  0x17   :  { %1225 = vmatpush3.bf16.msra.mxu0 %v1376_v7  ;;  %1350 = vmatpush3.bf16.msra.mxu1 %v1376_v7 }
  0x18   :  { %1226 = vmatprep.subr.bf16.mxu0 %v1377_v8  ;;  %1343 = vmatprep.subr.bf16.mxu1 %v1377_v8 }
  0x1b   :  { %1227 = vmatpush3.bf16.msra.mxu0 %v1377_v8  ;;  %1351 = vmatpush3.bf16.msra.mxu1 %v1377_v8 }
  0x1c   :  { %1228 = vmatprep.subr.bf16.mxu0 %v1378_v9  ;;  %1344 = vmatprep.subr.bf16.mxu1 %v1378_v9 }
  0x1f   :  { %1229 = vmatpush3.bf16.msra.mxu0 %v1378_v9  ;;  %1352 = vmatpush3.bf16.msra.mxu1 %v1378_v9 }
  0x20   :  { %1230 = vmatprep.subr.bf16.mxu0 %v1379_v10  ;;  %1345 = vmatprep.subr.bf16.mxu1 %v1379_v10 }
  0x23   :  { %1231 = vmatpush3.bf16.msra.mxu0 %v1379_v10  ;;  %1353 = vmatpush3.bf16.msra.mxu1 %v1379_v10 }
  0x24   :  { %1232 = vmatprep.subr.bf16.mxu0 %v1380_v11  ;;  %1346 = vmatprep.subr.bf16.mxu1 %v1380_v11 }
  0x27   :  { %1233 = vmatpush3.bf16.msra.mxu0 %v1380_v11  ;;  %1354 = vmatpush3.bf16.msra.mxu1 %v1380_v11 }
  0x28   :  { %1234 = vmatprep.subr.bf16.mxu0 %v1381_v12  ;;  %1347 = vmatprep.subr.bf16.mxu1 %v1381_v12 }
  0x2b   :  { %1235 = vmatpush3.bf16.msra.mxu0 %v1381_v12  ;;  %1355 = vmatpush3.bf16.msra.mxu1 %v1381_v12 }
  0x2e   :  { %1237 = vmatmul.mubr.bf16.vlgmr.msra.gmra.mrb[0].mxu0 %v139_v15  ;;  %1245 = vmatmul.mubr.bf16.vlgmr.msra.gmra.mrb[0].mxu1 %v143_v16 }
  0x2f   :  { %1240 = vmatprep.mubr.bf16.mxu0 %v140_v17  ;;  %1248 = vmatprep.mubr.bf16.mxu1 %v144_v18 }
  0x36   :  { %1241 = vmatmul.mubr.bf16.gmra.mrb[4].mxu0 %v141_v19  ;;  %1249 = vmatmul.mubr.bf16.gmra.mrb[4].mxu1 %v145_v20 }
 0x101   :  { %v1238_v25 = vpop.f32.mrb[0].mxu0  ;;  %v1246_v26 = vpop.f32.mrb[0].mxu1 }
 0x102   :  { %v293_v29 = vadd.f32 %v1238_v25, %v120_v21  ;;  %v301_v30 = vadd.f32 %v1246_v26, %v128_v22  ;;  %v228_v31 = vpop.f32.mrb[1].mxu0  ;;  %v260_v32 = vpop.f32.mrb[1].mxu1 }
 0x103   :  { %v291_v35 = vadd.f32 %v228_v31, %v118_v23  ;;  %v299_v36 = vadd.f32 %v260_v32, %v126_v24  ;;  %v1239_v37 = vpop.f32.mrb[2].mxu0  ;;  %v1247_v38 = vpop.f32.mrb[2].mxu1 }
 0x104   :  { %309 = vst [vmem:[#allocation2 + $0x10] sm:$0xff] %v293_v29  ;;  %317 = vst [vmem:[#allocation2 + $0x50] sm:$0xff] %v301_v30  ;;  %v294_v39 = vadd.f32 %v1239_v37, %v121_v27  ;;  %v302_v40 = vadd.f32 %v1247_v38, %v129_v28  ;;  %v231_v41 = vpop.f32.mrb[3].mxu0  ;;  %v263_v42 = vpop.f32.mrb[3].mxu1 }
 0x105   :  { %307 = vst [vmem:[#allocation2] sm:$0xff] %v291_v35  ;;  %315 = vst [vmem:[#allocation2 + $0x40] sm:$0xff] %v299_v36  ;;  %v292_v43 = vadd.f32 %v231_v41, %v119_v33  ;;  %v300_v44 = vadd.f32 %v263_v42, %v127_v34 }
 0x106   :  { %310 = vst [vmem:[#allocation2 + $0x18] sm:$0xff] %v294_v39  ;;  %318 = vst [vmem:[#allocation2 + $0x58] sm:$0xff] %v302_v40 }
 0x107   :  { %308 = vst [vmem:[#allocation2 + $0x8] sm:$0xff] %v292_v43  ;;  %316 = vst [vmem:[#allocation2 + $0x48] sm:$0xff] %v300_v44 }
 0x109   :  { %v1242_v49 = vpop.f32.mrb[4].mxu0  ;;  %v1250_v50 = vpop.f32.mrb[4].mxu1 }
 0x10a   :  { %v297_v53 = vadd.f32 %v1242_v49, %v124_v45  ;;  %v305_v54 = vadd.f32 %v1250_v50, %v132_v46  ;;  %v244_v55 = vpop.f32.mrb[5].mxu0  ;;  %v276_v56 = vpop.f32.mrb[5].mxu1 }
 0x10b   :  { %v295_v59 = vadd.f32 %v244_v55, %v122_v47  ;;  %v303_v60 = vadd.f32 %v276_v56, %v130_v48  ;;  %v1243_v61 = vpop.f32.mrb[6].mxu0  ;;  %v1251_v62 = vpop.f32.mrb[6].mxu1 }
 0x10c   :  { %313 = vst [vmem:[#allocation2 + $0x30] sm:$0xff] %v297_v53  ;;  %321 = vst [vmem:[#allocation2 + $0x70] sm:$0xff] %v305_v54  ;;  %v298_v63 = vadd.f32 %v1243_v61, %v125_v51  ;;  %v306_v0 = vadd.f32 %v1251_v62, %v133_v52  ;;  %v247_v1 = vpop.f32.mrb[7].mxu0  ;;  %v279_v2 = vpop.f32.mrb[7].mxu1 }
 0x10d   :  { %311 = vst [vmem:[#allocation2 + $0x20] sm:$0xff] %v295_v59  ;;  %319 = vst [vmem:[#allocation2 + $0x60] sm:$0xff] %v303_v60  ;;  %v296_v3 = vadd.f32 %v247_v1, %v123_v57  ;;  %v304_v4 = vadd.f32 %v279_v2, %v131_v58 }
 0x10e   :  { %314 = vst [vmem:[#allocation2 + $0x38] sm:$0xff] %v298_v63  ;;  %322 = vst [vmem:[#allocation2 + $0x78] sm:$0xff] %v306_v0 }
 0x10f   :  { %312 = vst [vmem:[#allocation2 + $0x28] sm:$0xff] %v296_v3  ;;  %320 = vst [vmem:[#allocation2 + $0x68] sm:$0xff] %v304_v4 }
 0x110 PF:  { %v343_v5 = vld [vmem:[%s2165_s4 + $0x8] sm:$0xff]  ;;  %v342_v6 = vld [vmem:[%s2165_s4] sm:$0xff]  ;;  %v1481_v7 = vmov 0   ;;  %v598_v13 = vld [vmem:[%s2168_s7 + $0x10] sm:$0xff] }
 0x111   :  { %1383 = vset.pattern.permute.xlu1 %v1481_v7  ;;  %1382 = vset.pattern.permute.xlu0 %v1481_v7  ;;  %v351_v8 = vld [vmem:[%s2165_s4 + $0x48] sm:$0xff]  ;;  %v350_v9 = vld [vmem:[%s2165_s4 + $0x40] sm:$0xff]  ;;  %v599_v14 = vld [vmem:[%s2168_s7 + $0x18] sm:$0xff] }
 0x112   :  { %365 = vperm.xlu1 %1383, %v343_v5   ;;  %360 = vperm.xlu0 %1382, %v342_v6   ;;  %v596_v10 = vld [vmem:[%s2168_s7] sm:$0xff]  ;;  %v597_v11 = vld [vmem:[%s2168_s7 + $0x8] sm:$0xff]  ;;  %v352_v15 = vld [vmem:[%s2165_s4 + $0x50] sm:$0xff]  ;;  %v1312_v17 = vpack.c.bf16 %v599_v14, %v598_v13 }
 0x113   :  { %v1308_v12 = vpack.c.bf16 %v597_v11, %v596_v10  ;;  %v344_v16 = vld [vmem:[%s2165_s4 + $0x10] sm:$0xff]  ;;  %v600_v18 = vld [vmem:[%s2168_s7 + $0x20] sm:$0xff]  ;;  %v601_v19 = vld [vmem:[%s2168_s7 + $0x28] sm:$0xff] }
 0x114   :  { %v353_v20 = vld [vmem:[%s2165_s4 + $0x58] sm:$0xff]  ;;  %v1316_v22 = vpack.c.bf16 %v601_v19, %v600_v18  ;;  %v602_v23 = vld [vmem:[%s2168_s7 + $0x30] sm:$0xff]  ;;  %v354_v25 = vld [vmem:[%s2165_s4 + $0x60] sm:$0xff] }
 0x115   :  { %1309 = vmatprep.subr.bf16.mxu0 %v1308_v12  ;;  %1356 = vmatprep.subr.bf16.mxu1 %v1308_v12  ;;  %v345_v21 = vld [vmem:[%s2165_s4 + $0x18] sm:$0xff]  ;;  %v346_v26 = vld [vmem:[%s2165_s4 + $0x20] sm:$0xff]  ;;  %v605_v29 = vld [vmem:[%s2168_s7 + $0x48] sm:$0xff] }
 0x116   :  { %405 = vperm.xlu1 %1383, %v351_v8   ;;  %400 = vperm.xlu0 %1382, %v350_v9   ;;  %v603_v24 = vld [vmem:[%s2168_s7 + $0x38] sm:$0xff]  ;;  %v604_v28 = vld [vmem:[%s2168_s7 + $0x40] sm:$0xff]  ;;  %v355_v30 = vld [vmem:[%s2165_s4 + $0x68] sm:$0xff] }
 0x117   :  { %1311 = vmatpush3.bf16.msra.mxu0 %v1308_v12  ;;  %1364 = vmatpush3.bf16.msra.mxu1 %v1308_v12  ;;  %v1320_v27 = vpack.c.bf16 %v603_v24, %v602_v23  ;;  %v347_v31 = vld [vmem:[%s2165_s4 + $0x28] sm:$0xff]  ;;  %v1324_v32 = vpack.c.bf16 %v605_v29, %v604_v28  ;;  %v606_v33 = vld [vmem:[%s2168_s7 + $0x50] sm:$0xff]  ;;  %v607_v34 = vld [vmem:[%s2168_s7 + $0x58] sm:$0xff] }
 0x118   :  { %1313 = vmatprep.subr.bf16.mxu0 %v1312_v17  ;;  %1357 = vmatprep.subr.bf16.mxu1 %v1312_v17  ;;  %v356_v35 = vld [vmem:[%s2165_s4 + $0x70] sm:$0xff]  ;;  %v1328_v37 = vpack.c.bf16 %v607_v34, %v606_v33  ;;  %v608_v38 = vld [vmem:[%s2168_s7 + $0x60] sm:$0xff]  ;;  %v609_v39 = vld [vmem:[%s2168_s7 + $0x68] sm:$0xff] }
 0x119   :  { %v348_v36 = vld [vmem:[%s2165_s4 + $0x30] sm:$0xff]  ;;  %v357_v40 = vld [vmem:[%s2165_s4 + $0x78] sm:$0xff]  ;;  %v1332_v42 = vpack.c.bf16 %v609_v39, %v608_v38  ;;  %v327_v46 = vld [vmem:[#allocation2 + $0x8] sm:$0xff] }
 0x11a   :  { %410 = vperm.xlu1 %1383, %v352_v15   ;;  %370 = vperm.xlu0 %1382, %v344_v16   ;;  %v349_v41 = vld [vmem:[%s2165_s4 + $0x38] sm:$0xff]  ;;  %v610_v43 = vld [vmem:[%s2168_s7 + $0x70] sm:$0xff]  ;;  %v326_v47 = vld [vmem:[#allocation2] sm:$0xff] }
 0x11b   :  { %1315 = vmatpush3.bf16.msra.mxu0 %v1312_v17  ;;  %1365 = vmatpush3.bf16.msra.mxu1 %v1312_v17  ;;  %v611_v44 = vld [vmem:[%s2168_s7 + $0x78] sm:$0xff]  ;;  %v1679_v48 = vld [vmem:[%s2166_s5] ss:$0 sm:$0xff]  ;;  %v335_v53 = vld [vmem:[#allocation2 + $0x48] sm:$0xff] }
 0x11c   :  { %1317 = vmatprep.subr.bf16.mxu0 %v1316_v22  ;;  %1358 = vmatprep.subr.bf16.mxu1 %v1316_v22  ;;  %v1336_v45 = vpack.c.bf16 %v611_v44, %v610_v43  ;;  %v334_v54 = vld [vmem:[#allocation2 + $0x40] sm:$0xff]  ;;  %v336_v63 = vld [vmem:[#allocation2 + $0x50] sm:$0xff]  ;;  %v337_v12 = vld [vmem:[#allocation2 + $0x58] sm:$0xff] }
 0x11d   :  { %v1684_v55 = vld [vmem:[%s2167_s6] ss:$0 sm:$0xff]  ;;  %v328_v0 = vld [vmem:[#allocation2 + $0x10] sm:$0xff]  ;;  %v329_v13 = vld [vmem:[#allocation2 + $0x18] sm:$0xff] }
 0x11e   :  { %415 = vperm.xlu1 %1383, %v353_v20   ;;  %375 = vperm.xlu0 %1382, %v345_v21   ;;  %v339_v38 = vld [vmem:[#allocation2 + $0x68] sm:$0xff] }
 0x11f   :  { %1319 = vmatpush3.bf16.msra.mxu0 %v1316_v22  ;;  %1366 = vmatpush3.bf16.msra.mxu1 %v1316_v22  ;;  %v331_v39 = vld [vmem:[#allocation2 + $0x28] sm:$0xff] }
 0x120   :  { %1321 = vmatprep.subr.bf16.mxu0 %v1320_v27  ;;  %1359 = vmatprep.subr.bf16.mxu1 %v1320_v27 }
 0x122   :  { %420 = vperm.xlu1 %1383, %v354_v25   ;;  %380 = vperm.xlu0 %1382, %v346_v26   ;;  %v338_v25 = vld [vmem:[#allocation2 + $0x60] sm:$0xff] }
 0x123   :  { %1323 = vmatpush3.bf16.msra.mxu0 %v1320_v27  ;;  %1367 = vmatpush3.bf16.msra.mxu1 %v1320_v27  ;;  %v330_v26 = vld [vmem:[#allocation2 + $0x20] sm:$0xff] }
 0x124   :  { %1325 = vmatprep.subr.bf16.mxu0 %v1324_v32  ;;  %1360 = vmatprep.subr.bf16.mxu1 %v1324_v32 }
 0x126   :  { %425 = vperm.xlu1 %1383, %v355_v30   ;;  %385 = vperm.xlu0 %1382, %v347_v31  }
 0x127   :  { %1327 = vmatpush3.bf16.msra.mxu0 %v1324_v32  ;;  %1368 = vmatpush3.bf16.msra.mxu1 %v1324_v32 }
 0x128   :  { %1329 = vmatprep.subr.bf16.mxu0 %v1328_v37  ;;  %1361 = vmatprep.subr.bf16.mxu1 %v1328_v37 }
 0x12a   :  { %430 = vperm.xlu1 %1383, %v356_v35   ;;  %390 = vperm.xlu0 %1382, %v348_v36  }
 0x12b   :  { %1331 = vmatpush3.bf16.msra.mxu0 %v1328_v37  ;;  %1369 = vmatpush3.bf16.msra.mxu1 %v1328_v37 }
 0x12c   :  { %1333 = vmatprep.subr.bf16.mxu0 %v1332_v42  ;;  %1362 = vmatprep.subr.bf16.mxu1 %v1332_v42 }
 0x12e   :  { %435 = vperm.xlu1 %1383, %v357_v40   ;;  %395 = vperm.xlu0 %1382, %v349_v41  }
 0x12f   :  { %1335 = vmatpush3.bf16.msra.mxu0 %v1332_v42  ;;  %1370 = vmatpush3.bf16.msra.mxu1 %v1332_v42 }
 0x130   :  { %1337 = vmatprep.subr.bf16.mxu0 %v1336_v45  ;;  %1363 = vmatprep.subr.bf16.mxu1 %v1336_v45 }
 0x133   :  { %1339 = vmatpush3.bf16.msra.mxu0 %v1336_v45  ;;  %1371 = vmatpush3.bf16.msra.mxu1 %v1336_v45 }
 0x191   :  { %v366_v49 = vpop.permute.xlu1 %365  ;;  %v361_v50 = vpop.permute.xlu0 %360 }
 0x192   :  { %v439_v51 = vmul.f32 %v366_v49, %v327_v46  ;;  %v438_v52 = vmul.f32 %v361_v50, %v326_v47 }
 0x194   :  { %v462_v56 = vadd.f32 %v1679_v48, %v439_v51  ;;  %v461_v57 = vadd.f32 %v1679_v48, %v438_v52  ;;  %v340_v52 = vld [vmem:[#allocation2 + $0x70] sm:$0xff] }
 0x195   :  { %v406_v58 = vpop.permute.xlu1 %405  ;;  %v401_v59 = vpop.permute.xlu0 %400 }
 0x196   :  { %v447_v60 = vmul.f32 %v406_v58, %v335_v53  ;;  %v446_v61 = vmul.f32 %v401_v59, %v334_v54  ;;  %vm477_vm0 = vcmp.gt.f32.partialorder %v461_v57, 0.0  ;;  %v500_v62 = vmul.f32 %v1684_v55, %v461_v57  ;;  %v332_v53 = vld [vmem:[#allocation2 + $0x30] sm:$0xff] }
 0x197   :  { %vm478_vm1 = vcmp.gt.f32.partialorder %v462_v56, 0.0  ;;  %v501_v1 = vmul.f32 %v1684_v55, %v462_v56 }
 0x198   :  { %v470_v2 = vadd.f32 %v1679_v48, %v447_v60  ;;  %v469_v3 = vadd.f32 %v1679_v48, %v446_v61  ;;  %v516_v4 = vsel %vm477_vm0, %v461_v57, %v500_v62 }
 0x199   :  { %v411_v5 = vpop.permute.xlu1 %410  ;;  %v371_v6 = vpop.permute.xlu0 %370  ;;  %532 = vst [vmem:[%s2171_s10] sm:$0xff] %v516_v4  ;;  %1284 = vmatprep.mubr.f32.mxu0 %v516_v4  ;;  %v517_v7 = vsel %vm478_vm1, %v462_v56, %v501_v1  ;;  %v548_v8 = vmul.f32 %v516_v4, %v516_v4 }
 0x19a   :  { %v448_v9 = vmul.f32 %v411_v5, %v336_v63  ;;  %v440_v10 = vmul.f32 %v371_v6, %v328_v0  ;;  %533 = vst [vmem:[%s2171_s10 + $0x8] sm:$0xff] %v517_v7  ;;  %1285 = vmatmul.mubr.f32.vlgmr.msra.gmra.mrb[0].mxu0 %v517_v7  ;;  %vm485_vm2 = vcmp.gt.f32.partialorder %v469_v3, 0.0  ;;  %v508_v11 = vmul.f32 %v1684_v55, %v469_v3 }
 0x19b   :  { %564 = vadd.xlane.f32.xlu0 %v548_v8  ;;  %v549_v14 = vmul.f32 %v517_v7, %v517_v7  ;;  %vm486_vm3 = vcmp.gt.f32.partialorder %v470_v2, 0.0  ;;  %v509_v15 = vmul.f32 %v1684_v55, %v470_v2 }
 0x19c   :  { %v471_v16 = vadd.f32 %v1679_v48, %v448_v9  ;;  %v463_v17 = vadd.f32 %v1679_v48, %v440_v10  ;;  %v1702_v18 = vsel %vm485_vm2, %v469_v3, %v508_v11  ;;  %v333_v3 = vld [vmem:[#allocation2 + $0x38] sm:$0xff] }
 0x19d   :  { %v416_v19 = vpop.permute.xlu1 %415  ;;  %v376_v20 = vpop.permute.xlu0 %375  ;;  %540 = vst [vmem:[%s2171_s10 + $0x40] sm:$0xff] %v1702_v18  ;;  %1296 = vmatprep.mubr.f32.mxu1 %v1702_v18  ;;  %566 = vadd.xlane.f32.xlu1 %v549_v14  ;;  %v1709_v21 = vsel %vm486_vm3, %v470_v2, %v509_v15  ;;  %v341_v2 = vld [vmem:[#allocation2 + $0x78] sm:$0xff] }
 0x19e   :  { %v449_v22 = vmul.f32 %v416_v19, %v337_v12  ;;  %v441_v23 = vmul.f32 %v376_v20, %v329_v13  ;;  %541 = vst [vmem:[%s2171_s10 + $0x48] sm:$0xff] %v1709_v21  ;;  %1297 = vmatmul.mubr.f32.vlgmr.msra.gmra.mrb[0].mxu1 %v1709_v21  ;;  %vm479_vm4 = vcmp.gt.f32.partialorder %v463_v17, 0.0  ;;  %v502_v24 = vmul.f32 %v1684_v55, %v463_v17 }
 0x19f   :  { %vm487_vm5 = vcmp.gt.f32.partialorder %v471_v16, 0.0  ;;  %v510_v27 = vmul.f32 %v1684_v55, %v471_v16 }
 0x1a0   :  { %v472_v28 = vadd.f32 %v1679_v48, %v449_v22  ;;  %v464_v29 = vadd.f32 %v1679_v48, %v441_v23  ;;  %v518_v30 = vsel %vm479_vm4, %v463_v17, %v502_v24 }
 0x1a1   :  { %v421_v31 = vpop.permute.xlu1 %420  ;;  %v381_v32 = vpop.permute.xlu0 %380  ;;  %534 = vst [vmem:[%s2171_s10 + $0x10] sm:$0xff] %v518_v30  ;;  %1287 = vmatprep.mubr.f32.mxu0 %v518_v30  ;;  %v1723_v33 = vsel %vm487_vm5, %v471_v16, %v510_v27  ;;  %v550_v34 = vmul.f32 %v518_v30, %v518_v30 }
 0x1a2   :  { %v450_v35 = vmul.f32 %v421_v31, %v338_v25  ;;  %v442_v36 = vmul.f32 %v381_v32, %v330_v26  ;;  %542 = vst [vmem:[%s2171_s10 + $0x50] sm:$0xff] %v1723_v33  ;;  %1299 = vmatprep.mubr.f32.mxu1 %v1723_v33  ;;  %vm480_vm6 = vcmp.gt.f32.partialorder %v464_v29, 0.0  ;;  %v503_v37 = vmul.f32 %v1684_v55, %v464_v29 }
 0x1a3   :  { %568 = vadd.xlane.f32.xlu0 %v550_v34  ;;  %vm488_vm7 = vcmp.gt.f32.partialorder %v472_v28, 0.0  ;;  %v511_v40 = vmul.f32 %v1684_v55, %v472_v28  ;;  %v556_v26 = vmul.f32 %v1702_v18, %v1702_v18 }
 0x1a4   :  { %v473_v41 = vadd.f32 %v1679_v48, %v450_v35  ;;  %v465_v42 = vadd.f32 %v1679_v48, %v442_v36  ;;  %v519_v43 = vsel %vm480_vm6, %v464_v29, %v503_v37 }
 0x1a5   :  { %v426_v44 = vpop.permute.xlu1 %425  ;;  %v386_v45 = vpop.permute.xlu0 %385  ;;  %535 = vst [vmem:[%s2171_s10 + $0x18] sm:$0xff] %v519_v43  ;;  %1288 = vmatmul.mubr.f32.gmra.mrb[2].mxu0 %v519_v43  ;;  %v1737_v46 = vsel %vm488_vm7, %v472_v28, %v511_v40  ;;  %v551_v47 = vmul.f32 %v519_v43, %v519_v43  ;;  %v557_v28 = vmul.f32 %v1709_v21, %v1709_v21  ;;  %v1795_v40 = vld [vmem:[%s2169_s8] ss:$0 sm:$0xff] }
 0x1a6   :  { %v451_v49 = vmul.f32 %v426_v44, %v339_v38  ;;  %v443_v50 = vmul.f32 %v386_v45, %v331_v39  ;;  %543 = vst [vmem:[%s2171_s10 + $0x58] sm:$0xff] %v1737_v46  ;;  %1300 = vmatmul.mubr.f32.gmra.mrb[2].mxu1 %v1737_v46  ;;  %vm481_vm8 = vcmp.gt.f32.partialorder %v465_v42, 0.0  ;;  %v504_v51 = vmul.f32 %v1684_v55, %v465_v42 }
 0x1a7   :  { %570 = vadd.xlane.f32.xlu0 %v551_v47  ;;  %vm489_vm9 = vcmp.gt.f32.partialorder %v473_v41, 0.0  ;;  %v512_v54 = vmul.f32 %v1684_v55, %v473_v41  ;;  %v559_v30 = vmul.f32 %v1737_v46, %v1737_v46 }
 0x1a8   :  { %v474_v56 = vadd.f32 %v1679_v48, %v451_v49  ;;  %v466_v57 = vadd.f32 %v1679_v48, %v443_v50  ;;  %v520_v58 = vsel %vm481_vm8, %v465_v42, %v504_v51 }
 0x1a9   :  { %v431_v59 = vpop.permute.xlu1 %430  ;;  %v391_v60 = vpop.permute.xlu0 %390  ;;  %536 = vst [vmem:[%s2171_s10 + $0x20] sm:$0xff] %v520_v58  ;;  %1290 = vmatprep.mubr.f32.mxu0 %v520_v58  ;;  %v528_v61 = vsel %vm489_vm9, %v473_v41, %v512_v54  ;;  %v552_v62 = vmul.f32 %v520_v58, %v520_v58 }
 0x1aa   :  { %v452_v63 = vmul.f32 %v431_v59, %v340_v52  ;;  %v444_v0 = vmul.f32 %v391_v60, %v332_v53  ;;  %544 = vst [vmem:[%s2171_s10 + $0x60] sm:$0xff] %v528_v61  ;;  %1302 = vmatprep.mubr.f32.mxu1 %v528_v61  ;;  %vm482_vm10 = vcmp.gt.f32.partialorder %v466_v57, 0.0  ;;  %v505_v1 = vmul.f32 %v1684_v55, %v466_v57 }
 0x1ab   :  { %572 = vadd.xlane.f32.xlu1 %v552_v62  ;;  %vm490_vm11 = vcmp.gt.f32.partialorder %v474_v56, 0.0  ;;  %v513_v4 = vmul.f32 %v1684_v55, %v474_v56  ;;  %v560_v29 = vmul.f32 %v528_v61, %v528_v61 }
 0x1ac   :  { %v475_v5 = vadd.f32 %v1679_v48, %v452_v63  ;;  %v467_v6 = vadd.f32 %v1679_v48, %v444_v0  ;;  %v521_v7 = vsel %vm482_vm10, %v466_v57, %v505_v1 }
 0x1ad   :  { %v436_v8 = vpop.permute.xlu1 %435  ;;  %v396_v9 = vpop.permute.xlu0 %395  ;;  %537 = vst [vmem:[%s2171_s10 + $0x28] sm:$0xff] %v521_v7  ;;  %1291 = vmatmul.mubr.f32.gmra.mrb[4].mxu0 %v521_v7  ;;  %v529_v10 = vsel %vm490_vm11, %v474_v56, %v513_v4  ;;  %v553_v11 = vmul.f32 %v521_v7, %v521_v7 }
 0x1ae   :  { %v453_v12 = vmul.f32 %v436_v8, %v341_v2  ;;  %v445_v13 = vmul.f32 %v396_v9, %v333_v3  ;;  %545 = vst [vmem:[%s2171_s10 + $0x68] sm:$0xff] %v529_v10  ;;  %1303 = vmatmul.mubr.f32.gmra.mrb[4].mxu1 %v529_v10  ;;  %vm483_vm12 = vcmp.gt.f32.partialorder %v467_v6, 0.0  ;;  %v506_v14 = vmul.f32 %v1684_v55, %v467_v6 }
 0x1af   :  { %574 = vadd.xlane.f32.xlu0 %v553_v11  ;;  %vm491_vm13 = vcmp.gt.f32.partialorder %v475_v5, 0.0  ;;  %v514_v15 = vmul.f32 %v1684_v55, %v475_v5  ;;  %v561_v32 = vmul.f32 %v529_v10, %v529_v10 }
 0x1b0   :  { %v476_v16 = vadd.f32 %v1679_v48, %v453_v12  ;;  %v468_v17 = vadd.f32 %v1679_v48, %v445_v13  ;;  %v522_v19 = vsel %vm483_vm12, %v467_v6, %v506_v14 }
 0x1b1   :  { %538 = vst [vmem:[%s2171_s10 + $0x30] sm:$0xff] %v522_v19  ;;  %1293 = vmatprep.mubr.f32.mxu0 %v522_v19  ;;  %v530_v20 = vsel %vm491_vm13, %v475_v5, %v514_v15  ;;  %v554_v22 = vmul.f32 %v522_v19, %v522_v19 }
 0x1b2   :  { %546 = vst [vmem:[%s2171_s10 + $0x70] sm:$0xff] %v530_v20  ;;  %1305 = vmatprep.mubr.f32.mxu1 %v530_v20  ;;  %vm484_vm14 = vcmp.gt.f32.partialorder %v468_v17, 0.0  ;;  %v507_v23 = vmul.f32 %v1684_v55, %v468_v17  ;;  %vm492_vm15 = vcmp.gt.f32.partialorder %v476_v16, 0.0  ;;  %v515_v24 = vmul.f32 %v1684_v55, %v476_v16 }
 0x1b3   :  { %576 = vadd.xlane.f32.xlu1 %v554_v22  ;;  %v558_v55 = vmul.f32 %v1723_v33, %v1723_v33  ;;  %v562_v31 = vmul.f32 %v530_v20, %v530_v20 }
 0x1b4   :  { %v523_v48 = vsel %vm484_vm14, %v468_v17, %v507_v23  ;;  %v531_v25 = vsel %vm492_vm15, %v476_v16, %v515_v24 }
 0x1b5   :  { %539 = vst [vmem:[%s2171_s10 + $0x38] sm:$0xff] %v523_v48  ;;  %1294 = vmatmul.mubr.f32.gmra.mrb[6].mxu0 %v523_v48  ;;  %547 = vst [vmem:[%s2171_s10 + $0x78] sm:$0xff] %v531_v25  ;;  %1306 = vmatmul.mubr.f32.gmra.mrb[6].mxu1 %v531_v25  ;;  %v555_v27 = vmul.f32 %v523_v48, %v523_v48  ;;  %v563_v18 = vmul.f32 %v531_v25, %v531_v25 }
 0x1b7   :  { %580 = vadd.xlane.f32.xlu1 %v556_v26  ;;  %578 = vadd.xlane.f32.xlu0 %v555_v27 }
 0x1bb   :  { %584 = vadd.xlane.f32.xlu1 %v558_v55  ;;  %582 = vadd.xlane.f32.xlu0 %v557_v28 }
 0x1bf   :  { %588 = vadd.xlane.f32.xlu1 %v560_v29  ;;  %586 = vadd.xlane.f32.xlu0 %v559_v30 }
 0x1c3   :  { %592 = vadd.xlane.f32.xlu1 %v562_v31  ;;  %590 = vadd.xlane.f32.xlu0 %v561_v32 }
 0x1c7   :  { %594 = vadd.xlane.f32.xlu0 %v563_v18 }
 0x228   :  { %v565_v34 = vpop.xlane.xlu0 %564 }
 0x229   :  { %v764_v45 = vadd.f32 %v1795_v40, %v565_v34 }
 0x22a   :  { %v567_v36 = vpop.xlane.xlu1 %566 }
 0x22b   :  { %v765_v42 = vadd.f32 %v1795_v40, %v567_v36 }
 0x230   :  { %v569_v35 = vpop.xlane.xlu0 %568 }
 0x231   :  { %v766_v7 = vadd.f32 %v1795_v40, %v569_v35 }
 0x234   :  { %v571_v33 = vpop.xlane.xlu0 %570 }
 0x235   :  { %v767_v8 = vadd.f32 %v1795_v40, %v571_v33 }
 0x238   :  { %v573_v21 = vpop.xlane.xlu1 %572 }
 0x239   :  { %v768_v27 = vadd.f32 %v1795_v40, %v573_v21 }
 0x23c   :  { %v575_v37 = vpop.xlane.xlu0 %574 }
 0x23d   :  { %v769_v31 = vadd.f32 %v1795_v40, %v575_v37 }
 0x240   :  { %v577_v39 = vpop.xlane.xlu1 %576 }
 0x241   :  { %v1808_v33 = vadd.f32 %v1795_v40, %v577_v39 }
 0x244   :  { %v1790_v38 = vpop.xlane.xlu0 %578  ;;  %v581_v49 = vpop.xlane.xlu1 %580 }
 0x245   :  { %v772_v58 = vadd.f32 %v1795_v40, %v581_v49 }
 0x248   :  { %v583_v46 = vpop.xlane.xlu0 %582  ;;  %v585_v1 = vpop.xlane.xlu1 %584 }
 0x249   :  { %v773_v53 = vadd.f32 %v1795_v40, %v583_v46  ;;  %v774_v11 = vadd.f32 %v1795_v40, %v585_v1 }
 0x24c   :  { %v587_v2 = vpop.xlane.xlu0 %586  ;;  %v589_v55 = vpop.xlane.xlu1 %588 }
 0x24d   :  { %v775_v12 = vadd.f32 %v1795_v40, %v587_v2 }
 0x250   :  { %v591_v32 = vpop.xlane.xlu0 %590 }
 0x26d   :  { %v1286_v41 = vpop.f32.mrb[0].mxu0 }
 0x26e   :  { %v781_v43 = vmul.f32 2.0, %v1286_v41  ;;  %v678_v44 = vpop.f32.mrb[1].mxu0 }
 0x26f   :  { %v780_v47 = vmul.f32 2.0, %v678_v44  ;;  %v777_v44 = vadd.f32 %v1795_v40, %v591_v32 }
 0x270   :  { %v797_v50 = vsub.f32 %v765_v42, %v781_v43  ;;  %v776_v42 = vadd.f32 %v1795_v40, %v589_v55 }
 0x271   :  { %v796_v51 = vsub.f32 %v764_v45, %v780_v47  ;;  %v1298_v52 = vpop.f32.mrb[0].mxu1 }
 0x272   :  { %v813_v54 = vmax.f32 %v797_v50, 0.0  ;;  %v789_v56 = vmul.f32 2.0, %v1298_v52  ;;  %v718_v57 = vpop.f32.mrb[1].mxu1 }
 0x273   :  { %v812_v59 = vmax.f32 %v796_v51, 0.0  ;;  %v788_v60 = vmul.f32 2.0, %v718_v57 }
 0x274   :  { %v829_v61 = vmul.f32 2.0, %v813_v54  ;;  %v805_v62 = vsub.f32 %v773_v53, %v789_v56 }
 0x275   :  { %v828_v63 = vmul.f32 2.0, %v812_v59  ;;  %v804_v0 = vsub.f32 %v772_v58, %v788_v60 }
 0x276   :  { %v845_v3 = vadd.f32 1.0, %v829_v61  ;;  %v821_v4 = vmax.f32 %v805_v62, 0.0  ;;  %v593_v62 = vpop.xlane.xlu1 %592 }
 0x277   :  { %v844_v5 = vadd.f32 1.0, %v828_v63  ;;  %v820_v6 = vmax.f32 %v804_v0, 0.0 }
 0x278   :  { %v837_v9 = vmul.f32 2.0, %v821_v4  ;;  %v1289_v10 = vpop.f32.mrb[2].mxu0  ;;  %v861_v17 = vadd.f32 1e-08, %v845_v3  ;;  %v595_v3 = vpop.xlane.xlu0 %594 }
 0x279   :  { %v836_v13 = vmul.f32 2.0, %v820_v6  ;;  %v783_v14 = vmul.f32 2.0, %v1289_v10  ;;  %v1301_v15 = vpop.f32.mrb[2].mxu1  ;;  %v688_v16 = vpop.f32.mrb[3].mxu0  ;;  %v860_v24 = vadd.f32 1e-08, %v844_v5  ;;  %v778_v10 = vadd.f32 %v1795_v40, %v593_v62 }
 0x27a   :  { %v853_v19 = vadd.f32 1.0, %v837_v9  ;;  %v791_v20 = vmul.f32 2.0, %v1301_v15  ;;  %v782_v22 = vmul.f32 2.0, %v688_v16  ;;  %v728_v23 = vpop.f32.mrb[3].mxu1  ;;  %1384 = vrcp.f32 %v861_v17 }
 0x27b   :  { %v852_v48 = vadd.f32 1.0, %v836_v13  ;;  %v799_v25 = vsub.f32 %v767_v8, %v783_v14  ;;  %v790_v26 = vmul.f32 2.0, %v728_v23  ;;  %1386 = vrcp.f32 %v860_v24 }
 0x27c   :  { %v869_v28 = vadd.f32 1e-08, %v853_v19  ;;  %v807_v29 = vsub.f32 %v775_v12, %v791_v20  ;;  %v798_v30 = vsub.f32 %v766_v7, %v782_v22  ;;  %v771_v7 = vadd.f32 %v1795_v40, %v1790_v38 }
 0x27d   :  { %v868_v18 = vadd.f32 1e-08, %v852_v48  ;;  %v815_v34 = vmax.f32 %v799_v25, 0.0  ;;  %v806_v35 = vsub.f32 %v774_v11, %v790_v26  ;;  %v779_v14 = vadd.f32 %v1795_v40, %v595_v3 }
 0x27e   :  { %v823_v36 = vmax.f32 %v807_v29, 0.0  ;;  %v814_v41 = vmax.f32 %v798_v30, 0.0  ;;  %1388 = vrcp.f32 %v869_v28 }
 0x27f   :  { %v831_v21 = vmul.f32 2.0, %v815_v34  ;;  %v822_v43 = vmax.f32 %v806_v35, 0.0  ;;  %1390 = vrcp.f32 %v868_v18 }
 0x280   :  { %v839_v45 = vmul.f32 2.0, %v823_v36  ;;  %v830_v37 = vmul.f32 2.0, %v814_v41  ;;  %v1292_v46 = vpop.f32.mrb[4].mxu0 }
 0x281   :  { %v847_v47 = vadd.f32 1.0, %v831_v21  ;;  %v838_v49 = vmul.f32 2.0, %v822_v43  ;;  %v785_v50 = vmul.f32 2.0, %v1292_v46  ;;  %v1304_v39 = vpop.f32.mrb[4].mxu1  ;;  %v698_v51 = vpop.f32.mrb[5].mxu0 }
 0x282   :  { %v855_v52 = vadd.f32 1.0, %v839_v45  ;;  %v846_v53 = vadd.f32 1.0, %v830_v37  ;;  %v793_v54 = vmul.f32 2.0, %v1304_v39  ;;  %v784_v56 = vmul.f32 2.0, %v698_v51  ;;  %v738_v57 = vpop.f32.mrb[5].mxu1 }
 0x283   :  { %v863_v58 = vadd.f32 1e-08, %v847_v47  ;;  %v854_v59 = vadd.f32 1.0, %v838_v49  ;;  %v801_v60 = vsub.f32 %v769_v31, %v785_v50  ;;  %v792_v61 = vmul.f32 2.0, %v738_v57 }
 0x284   :  { %v871_v63 = vadd.f32 1e-08, %v855_v52  ;;  %v862_v0 = vadd.f32 1e-08, %v846_v53  ;;  %v809_v1 = vsub.f32 %v777_v44, %v793_v54  ;;  %v800_v2 = vsub.f32 %v768_v27, %v784_v56  ;;  %v1815_v13 = vpop.eup %1384 }
 0x285   :  { %1392 = vrcp.f32 %v863_v58  ;;  %v870_v4 = vadd.f32 1e-08, %v854_v59  ;;  %v817_v5 = vmax.f32 %v801_v60, 0.0  ;;  %v808_v6 = vsub.f32 %v776_v42, %v792_v61  ;;  %v1818_v20 = vpop.eup %1386 }
 0x286   :  { %1394 = vrcp.f32 %v871_v63  ;;  %v825_v8 = vmax.f32 %v809_v1, 0.0  ;;  %v816_v9 = vmax.f32 %v800_v2, 0.0  ;;  %vm901_vm0 = vcmp.eq.f32.partialorder %v1815_v13, inf }
 0x287   :  { %1396 = vrcp.f32 %v862_v0  ;;  %v833_v11 = vmul.f32 2.0, %v817_v5  ;;  %v824_v12 = vmax.f32 %v808_v6, 0.0  ;;  %vm903_vm1 = vcmp.eq.f32.partialorder %v1815_v13, 0.0 }
 0x288   :  { %1398 = vrcp.f32 %v870_v4  ;;  %v841_v15 = vmul.f32 2.0, %v825_v8  ;;  %v832_v16 = vmul.f32 2.0, %v816_v9  ;;  %v1295_v17 = vpop.f32.mrb[6].mxu0  ;;  %v1307_v19 = vpop.f32.mrb[6].mxu1  ;;  %v904_v63 = vand.u32 2147483648, %v1815_v13 }
 0x289   :  { %v849_v38 = vadd.f32 1.0, %v833_v11  ;;  %v840_v22 = vmul.f32 2.0, %v824_v12  ;;  %v787_v23 = vmul.f32 2.0, %v1295_v17  ;;  %v795_v24 = vmul.f32 2.0, %v1307_v19  ;;  %v708_v48 = vpop.f32.mrb[7].mxu0  ;;  %v748_v25 = vpop.f32.mrb[7].mxu1 }
 0x28a   :  { %v1820_v26 = vpop.eup %1388  ;;  %v857_v27 = vadd.f32 1.0, %v841_v15  ;;  %v848_v55 = vadd.f32 1.0, %v832_v16  ;;  %v786_v28 = vmul.f32 2.0, %v708_v48  ;;  %v794_v29 = vmul.f32 2.0, %v748_v25 }
 0x28b   :  { %v1822_v40 = vpop.eup %1390  ;;  %v865_v30 = vadd.f32 1e-08, %v849_v38  ;;  %v856_v31 = vadd.f32 1.0, %v840_v22  ;;  %v803_v32 = vsub.f32 %v771_v7, %v787_v23  ;;  %v811_v18 = vsub.f32 %v779_v14, %v795_v24 }
 0x28c   :  { %v873_v34 = vadd.f32 1e-08, %v857_v27  ;;  %v864_v35 = vadd.f32 1e-08, %v848_v55  ;;  %v802_v36 = vsub.f32 %v1808_v33, %v786_v28  ;;  %v810_v41 = vsub.f32 %v778_v10, %v794_v29  ;;  %v1904_v29 = vld [vmem:[%s2170_s9] ss:$0 sm:$0xff] }
 0x28d   :  { %1400 = vrcp.f32 %v865_v30  ;;  %v872_v42 = vadd.f32 1e-08, %v856_v31  ;;  %v819_v21 = vmax.f32 %v803_v32, 0.0  ;;  %v827_v43 = vmax.f32 %v811_v18, 0.0 }
 0x28e   :  { %1402 = vrcp.f32 %v873_v34  ;;  %v818_v44 = vmax.f32 %v802_v36, 0.0  ;;  %v826_v45 = vmax.f32 %v810_v41, 0.0  ;;  %vm894_vm2 = vcmp.eq.f32.partialorder %v1818_v20, inf }
 0x28f   :  { %v1825_v37 = vpop.eup %1392  ;;  %1404 = vrcp.f32 %v864_v35  ;;  %v835_v46 = vmul.f32 2.0, %v819_v21  ;;  %v843_v47 = vmul.f32 2.0, %v827_v43  ;;  %vm896_vm3 = vcmp.eq.f32.partialorder %v1818_v20, 0.0 }
 0x290   :  { %v1827_v49 = vpop.eup %1394  ;;  %1406 = vrcp.f32 %v872_v42  ;;  %v834_v50 = vmul.f32 2.0, %v818_v44  ;;  %v842_v39 = vmul.f32 2.0, %v826_v45  ;;  %v897_v1 = vand.u32 2147483648, %v1818_v20 }
 0x291   :  { %v1829_v51 = vpop.eup %1396  ;;  %v851_v33 = vadd.f32 1.0, %v835_v46  ;;  %v859_v52 = vadd.f32 1.0, %v843_v47  ;;  %1408 = vrsqrt.f32 %v1815_v13  ;;  %vm957_vm4 = vcmp.eq.f32.partialorder %v1820_v26, inf }
 0x292   :  { %v1832_v53 = vpop.eup %1398  ;;  %v850_v54 = vadd.f32 1.0, %v834_v50  ;;  %v858_v56 = vadd.f32 1.0, %v842_v39  ;;  %1410 = vrsqrt.f32 %v1818_v20  ;;  %vm959_vm5 = vcmp.eq.f32.partialorder %v1820_v26, 0.0 }
 0x293   :  { %v867_v57 = vadd.f32 1e-08, %v851_v33  ;;  %v875_v58 = vadd.f32 1e-08, %v859_v52  ;;  %1412 = vrsqrt.f32 %v1820_v26  ;;  %v960_v3 = vand.u32 2147483648, %v1820_v26 }
 0x294   :  { %v866_v59 = vadd.f32 1e-08, %v850_v54  ;;  %v874_v60 = vadd.f32 1e-08, %v858_v56  ;;  %1414 = vrsqrt.f32 %v1822_v40  ;;  %vm950_vm6 = vcmp.eq.f32.partialorder %v1822_v40, inf }
 0x295   :  { %1416 = vrcp.f32 %v867_v57  ;;  %vm952_vm7 = vcmp.eq.f32.partialorder %v1822_v40, 0.0  ;;  %v953_v5 = vand.u32 2147483648, %v1822_v40  ;;  %v918_v8 = vand.u32 2147483648, %v1825_v37 }
 0x296   :  { %1418 = vrcp.f32 %v875_v58  ;;  %v911_v9 = vand.u32 2147483648, %v1829_v51  ;;  %vm915_vm8 = vcmp.eq.f32.partialorder %v1825_v37, inf  ;;  %v974_v12 = vand.u32 2147483648, %v1827_v49 }
 0x297   :  { %v1837_v61 = vpop.eup %1400  ;;  %1420 = vrcp.f32 %v866_v59  ;;  %v967_v14 = vand.u32 2147483648, %v1832_v53  ;;  %vm917_vm9 = vcmp.eq.f32.partialorder %v1825_v37, 0.0  ;;  %vm908_vm10 = vcmp.eq.f32.partialorder %v1829_v51, inf }
 0x298   :  { %v1839_v62 = vpop.eup %1402  ;;  %1422 = vrcp.f32 %v874_v60  ;;  %v932_v19 = vand.u32 2147483648, %v1837_v61  ;;  %vm910_vm11 = vcmp.eq.f32.partialorder %v1829_v51, 0.0  ;;  %vm971_vm12 = vcmp.eq.f32.partialorder %v1827_v49, inf }
 0x299   :  { %v1844_v0 = vpop.eup %1404  ;;  %1424 = vrsqrt.f32 %v1825_v37  ;;  %vm973_vm13 = vcmp.eq.f32.partialorder %v1827_v49, 0.0  ;;  %vm964_vm14 = vcmp.eq.f32.partialorder %v1832_v53, inf  ;;  %vm966_vm15 = vcmp.eq.f32.partialorder %v1832_v53, 0.0 }
 0x29a   :  { %v1850_v2 = vpop.eup %1406  ;;  %1426 = vrsqrt.f32 %v1829_v51  ;;  %v925_v42 = vand.u32 2147483648, %v1844_v0  ;;  %v988_v21 = vand.u32 2147483648, %v1839_v62 }
 0x29b   :  { %v1409_v4 = vpop.eup %1408  ;;  %1428 = vrsqrt.f32 %v1827_v49  ;;  %v981_v39 = vand.u32 2147483648, %v1850_v2 }
 0x29c   :  { %v1411_v6 = vpop.eup %1410  ;;  %v900_v7 = vmul.f32 %v1409_v4, %v1815_v13  ;;  %1430 = vrsqrt.f32 %v1832_v53 }
 0x29d   :  { %v1413_v10 = vpop.eup %1412  ;;  %v893_v11 = vmul.f32 %v1411_v6, %v1818_v20  ;;  %1432 = vrsqrt.f32 %v1837_v61 }
 0x29e   :  { %v1415_v15 = vpop.eup %1414  ;;  %v902_v16 = vsel %vm901_vm0, %v1815_v13, %v900_v7  ;;  %v956_v17 = vmul.f32 %v1413_v10, %v1820_v26  ;;  %1434 = vrsqrt.f32 %v1844_v0  ;;  %vm929_vm0 = vcmp.eq.f32.partialorder %v1837_v61, inf }
 0x29f   :  { %v1877_v38 = vpop.eup %1416  ;;  %v905_v22 = vsel %vm903_vm1, %v904_v63, %v902_v16  ;;  %v895_v23 = vsel %vm894_vm2, %v1818_v20, %v893_v11  ;;  %v949_v24 = vmul.f32 %v1415_v15, %v1822_v40  ;;  %1436 = vrsqrt.f32 %v1839_v62 }
 0x2a0   :  { %v1888_v48 = vpop.eup %1418  ;;  %v1005_v25 = vmul.f32 %v1815_v13, %v905_v22  ;;  %v898_v27 = vsel %vm896_vm3, %v897_v1, %v895_v23  ;;  %v958_v55 = vsel %vm957_vm4, %v1820_v26, %v956_v17  ;;  %1438 = vrsqrt.f32 %v1850_v2 }
 0x2a1   :  { %v1899_v28 = vpop.eup %1420  ;;  %v1004_v13 = vmul.f32 %v1818_v20, %v898_v27  ;;  %v961_v30 = vsel %vm959_vm5, %v960_v3, %v958_v55  ;;  %v951_v31 = vsel %vm950_vm6, %v1822_v40, %v949_v24  ;;  %1440 = vrsqrt.f32 %v1877_v38 }
 0x2a2   :  { %v1915_v32 = vpop.eup %1422  ;;  %v1021_v18 = vmul.f32 0.5, %v1005_v25  ;;  %v1013_v34 = vmul.f32 %v1820_v26, %v961_v30  ;;  %v954_v20 = vsel %vm952_vm7, %v953_v5, %v951_v31  ;;  %vm931_vm1 = vcmp.eq.f32.partialorder %v1837_v61, 0.0 }
 0x2a3   :  { %vm922_vm2 = vcmp.eq.f32.partialorder %v1844_v0, inf  ;;  %v1425_v35 = vpop.eup %1424  ;;  %v1020_v36 = vmul.f32 0.5, %v1004_v13  ;;  %v1012_v41 = vmul.f32 %v1822_v40, %v954_v20  ;;  %vm924_vm3 = vcmp.eq.f32.partialorder %v1844_v0, 0.0 }
 0x2a4   :  { %v1427_v43 = vpop.eup %1426  ;;  %v1927_v26 = vmul.f32 %v1904_v29, %v1021_v18  ;;  %v1029_v44 = vmul.f32 0.5, %v1013_v34  ;;  %v914_v45 = vmul.f32 %v1425_v35, %v1825_v37  ;;  %1442 = vrsqrt.f32 %v1899_v28 }
 0x2a5   :  { %v1429_v46 = vpop.eup %1428  ;;  %v1932_v47 = vmul.f32 %v1904_v29, %v1020_v36  ;;  %v1028_v40 = vmul.f32 0.5, %v1012_v41  ;;  %v907_v50 = vmul.f32 %v1427_v43, %v1829_v51  ;;  %vm985_vm4 = vcmp.eq.f32.partialorder %v1839_v62, inf }
 0x2a6   :  { %v1431_v33 = vpop.eup %1430  ;;  %1061 = vadd.xlane.f32.xlu0 %v1927_v26  ;;  %v1938_v52 = vmul.f32 %v1904_v29, %v1029_v44  ;;  %v916_v54 = vsel %vm915_vm8, %v1825_v37, %v914_v45  ;;  %v970_v56 = vmul.f32 %v1429_v46, %v1827_v49  ;;  %v946_v57 = vand.u32 2147483648, %v1877_v38 }
 0x2a7   :  { %v1433_v58 = vpop.eup %1432  ;;  %1059 = vadd.xlane.f32.xlu1 %v1932_v47  ;;  %v1948_v59 = vmul.f32 %v1904_v29, %v1028_v40  ;;  %v919_v60 = vsel %vm917_vm9, %v918_v8, %v916_v54  ;;  %v909_v63 = vsel %vm908_vm10, %v1829_v51, %v907_v50  ;;  %v963_v1 = vmul.f32 %v1431_v33, %v1832_v53 }
 0x2a8   :  { %vm987_vm5 = vcmp.eq.f32.partialorder %v1839_v62, 0.0  ;;  %vm978_vm6 = vcmp.eq.f32.partialorder %v1850_v2, inf  ;;  %vm943_vm7 = vcmp.eq.f32.partialorder %v1877_v38, inf  ;;  %v1435_v3 = vpop.eup %1434  ;;  %v1007_v4 = vmul.f32 %v1825_v37, %v919_v60 }
 0x2a9   :  { %v912_v5 = vsel %vm910_vm11, %v911_v9, %v909_v63  ;;  %v972_v6 = vsel %vm971_vm12, %v1827_v49, %v970_v56  ;;  %v928_v7 = vmul.f32 %v1433_v58, %v1837_v61  ;;  %vm980_vm8 = vcmp.eq.f32.partialorder %v1850_v2, 0.0  ;;  %v1437_v8 = vpop.eup %1436 }
 0x2aa   :  { %vm945_vm9 = vcmp.eq.f32.partialorder %v1877_v38, 0.0  ;;  %v1006_v10 = vmul.f32 %v1829_v51, %v912_v5  ;;  %v975_v37 = vsel %vm973_vm13, %v974_v12, %v972_v6  ;;  %v965_v9 = vsel %vm964_vm14, %v1832_v53, %v963_v1  ;;  %v1439_v15 = vpop.eup %1438  ;;  %1077 = vadd.xlane.f32.xlu0 %v1938_v52 }
 0x2ab   :  { %v921_v11 = vmul.f32 %v1435_v3, %v1844_v0  ;;  %v1023_v16 = vmul.f32 0.5, %v1007_v4  ;;  %v1015_v17 = vmul.f32 %v1827_v49, %v975_v37  ;;  %v968_v51 = vsel %vm966_vm15, %v967_v14, %v965_v9  ;;  %v1441_v22 = vpop.eup %1440  ;;  %1075 = vadd.xlane.f32.xlu1 %v1948_v59 }
 0x2ac   :  { %v930_v12 = vsel %vm929_vm0, %v1837_v61, %v928_v7  ;;  %v1022_v23 = vmul.f32 0.5, %v1006_v10  ;;  %v1014_v24 = vmul.f32 %v1832_v53, %v968_v51  ;;  %v977_v20 = vmul.f32 %v1439_v15, %v1850_v2 }
 0x2ad   :  { %v933_v49 = vsel %vm931_vm1, %v932_v19, %v930_v12  ;;  %v923_v25 = vsel %vm922_vm2, %v1844_v0, %v921_v11  ;;  %v2000_v14 = vmul.f32 %v1904_v29, %v1023_v16  ;;  %v1031_v27 = vmul.f32 0.5, %v1015_v17 }
 0x2ae   :  { %v1009_v55 = vmul.f32 %v1837_v61, %v933_v49  ;;  %v926_v13 = vsel %vm924_vm3, %v925_v42, %v923_v25  ;;  %v2006_v53 = vmul.f32 %v1904_v29, %v1022_v23  ;;  %v1030_v30 = vmul.f32 0.5, %v1014_v24  ;;  %v1443_v18 = vpop.eup %1442 }
 0x2af   :  { %v1008_v31 = vmul.f32 %v1844_v0, %v926_v13  ;;  %v984_v19 = vmul.f32 %v1437_v8, %v1839_v62  ;;  %1065 = vadd.xlane.f32.xlu0 %v2000_v14  ;;  %v942_v35 = vmul.f32 %v1441_v22, %v1877_v38  ;;  %vm936_vm10 = vcmp.eq.f32.partialorder %v1899_v28, inf }
 0x2b0   :  { %v1025_v34 = vmul.f32 0.5, %v1009_v55  ;;  %1063 = vadd.xlane.f32.xlu1 %v2006_v53  ;;  %v2016_v61 = vmul.f32 %v1904_v29, %v1031_v27  ;;  %v935_v41 = vmul.f32 %v1443_v18, %v1899_v28  ;;  %v2023_v42 = vmul.f32 %v1904_v29, %v1030_v30 }
 0x2b1   :  { %v1024_v36 = vmul.f32 0.5, %v1008_v31  ;;  %v986_v0 = vsel %vm985_vm4, %v1839_v62, %v984_v19  ;;  %v979_v44 = vsel %vm978_vm6, %v1850_v2, %v977_v20  ;;  %v944_v45 = vsel %vm943_vm7, %v1877_v38, %v942_v35 }
 0x2b2   :  { %v989_v43 = vsel %vm987_vm5, %v988_v21, %v986_v0  ;;  %v2036_v46 = vmul.f32 %v1904_v29, %v1025_v34  ;;  %v982_v50 = vsel %vm980_vm8, %v981_v39, %v979_v44  ;;  %v947_v21 = vsel %vm945_vm9, %v946_v57, %v944_v45 }
 0x2b3   :  { %v1017_v40 = vmul.f32 %v1839_v62, %v989_v43  ;;  %1081 = vadd.xlane.f32.xlu0 %v2016_v61  ;;  %v1016_v33 = vmul.f32 %v1850_v2, %v982_v50  ;;  %v1011_v54 = vmul.f32 %v1877_v38, %v947_v21  ;;  %v937_v56 = vsel %vm936_vm10, %v1899_v28, %v935_v41 }
 0x2b4   :  { %v939_v62 = vand.u32 2147483648, %v1899_v28  ;;  %1079 = vadd.xlane.f32.xlu1 %v2023_v42  ;;  %v2054_v58 = vmul.f32 %v1904_v29, %v1024_v36  ;;  %vm938_vm11 = vcmp.eq.f32.partialorder %v1899_v28, 0.0  ;;  %1444 = vrsqrt.f32 %v1888_v48 }
 0x2b5   :  { %v1033_v39 = vmul.f32 0.5, %v1017_v40  ;;  %v1032_v2 = vmul.f32 0.5, %v1016_v33  ;;  %1446 = vrsqrt.f32 %v1915_v32  ;;  %v1027_v60 = vmul.f32 0.5, %v1011_v54 }
 0x2b6   :  { %v940_v57 = vsel %vm938_vm11, %v939_v62, %v937_v56  ;;  %vm999_vm12 = vcmp.eq.f32.partialorder %v1888_v48, inf  ;;  %v1002_v8 = vand.u32 2147483648, %v1888_v48  ;;  %vm1001_vm13 = vcmp.eq.f32.partialorder %v1888_v48, 0.0 }
 0x2b7   :  { %v1010_v38 = vmul.f32 %v1899_v28, %v940_v57  ;;  %1069 = vadd.xlane.f32.xlu0 %v2036_v46  ;;  %v2063_v1 = vmul.f32 %v1904_v29, %v1033_v39  ;;  %v2066_v3 = vmul.f32 %v1904_v29, %v1032_v2  ;;  %v2070_v4 = vmul.f32 %v1904_v29, %v1027_v60 }
 0x2b8   :  { %1067 = vadd.xlane.f32.xlu1 %v2054_v58  ;;  %vm992_vm14 = vcmp.eq.f32.partialorder %v1915_v32, inf  ;;  %v995_v11 = vand.u32 2147483648, %v1915_v32  ;;  %vm994_vm15 = vcmp.eq.f32.partialorder %v1915_v32, 0.0 }
 0x2b9   :  { %v1026_v63 = vmul.f32 0.5, %v1010_v38 }
 0x2bb   :  { %1085 = vadd.xlane.f32.xlu0 %v2063_v1  ;;  %v2074_v28 = vmul.f32 %v1904_v29, %v1026_v63 }
 0x2bc   :  { %1083 = vadd.xlane.f32.xlu1 %v2066_v3 }
 0x2be   :  { %v1445_v5 = vpop.eup %1444 }
 0x2bf   :  { %1073 = vadd.xlane.f32.xlu0 %v2070_v4  ;;  %v998_v6 = vmul.f32 %v1445_v5, %v1888_v48  ;;  %v1447_v7 = vpop.eup %1446 }
 0x2c0   :  { %1071 = vadd.xlane.f32.xlu1 %v2074_v28  ;;  %v991_v37 = vmul.f32 %v1447_v7, %v1915_v32 }
 0x2c1   :  { %v1000_v10 = vsel %vm999_vm12, %v1888_v48, %v998_v6 }
 0x2c2   :  { %v1003_v9 = vsel %vm1001_vm13, %v1002_v8, %v1000_v10  ;;  %v993_v16 = vsel %vm992_vm14, %v1915_v32, %v991_v37 }
 0x2c3   :  { %v1019_v15 = vmul.f32 %v1888_v48, %v1003_v9  ;;  %v996_v17 = vsel %vm994_vm15, %v995_v11, %v993_v16 }
 0x2c4   :  { %v1018_v12 = vmul.f32 %v1915_v32, %v996_v17 }
 0x2c5   :  { %v1035_v51 = vmul.f32 0.5, %v1019_v15 }
 0x2c6   :  { %v1034_v23 = vmul.f32 0.5, %v1018_v12 }
 0x2c7   :  { %v2091_v22 = vmul.f32 %v1904_v29, %v1035_v51 }
 0x2c8   :  { %v2095_v24 = vmul.f32 %v1904_v29, %v1034_v23 }
 0x2c9   :  { %1089 = vadd.xlane.f32.xlu0 %v2091_v22 }
 0x2ca   :  { %1087 = vadd.xlane.f32.xlu1 %v2095_v24 }
 0x333   :  { %v1062_v48 = vpop.xlane.xlu0 %1061 }
 0x334   :  { %1448 = vrcp.f32 %v1062_v48  ;;  %v1060_v49 = vpop.xlane.xlu1 %1059 }
 0x335   :  { %1450 = vrcp.f32 %v1060_v49 }
 0x337   :  { %v1078_v25 = vpop.xlane.xlu0 %1077 }
 0x338   :  { %1452 = vrcp.f32 %v1078_v25  ;;  %v1076_v27 = vpop.xlane.xlu1 %1075 }
 0x339   :  { %1454 = vrcp.f32 %v1076_v27 }
 0x33c   :  { %v1066_v32 = vpop.xlane.xlu0 %1065 }
 0x33d   :  { %1456 = vrcp.f32 %v1066_v32  ;;  %v1064_v55 = vpop.xlane.xlu1 %1063 }
 0x33e   :  { %1458 = vrcp.f32 %v1064_v55  ;;  %v1449_v13 = vpop.eup %1448 }
 0x33f   :  { %v1451_v30 = vpop.eup %1450  ;;  %v1094_v31 = vmul.f32 %v1449_v13, %v1927_v26 }
 0x340   :  { %v1082_v29 = vpop.xlane.xlu0 %1081  ;;  %v1092_v19 = vmul.f32 %v1451_v30, %v1932_v47 }
 0x341   :  { %1460 = vrcp.f32 %v1082_v29  ;;  %v1080_v18 = vpop.xlane.xlu1 %1079  ;;  %1124 = vst [vmem:[%s2172_s11 + $0x8] sm:$0xff] %v1094_v31 }
 0x342   :  { %1462 = vrcp.f32 %v1080_v18  ;;  %v1453_v34 = vpop.eup %1452  ;;  %1123 = vst [vmem:[%s2172_s11] sm:$0xff] %v1092_v19 }
 0x343   :  { %v1455_v20 = vpop.eup %1454  ;;  %v1110_v35 = vmul.f32 %v1453_v34, %v1938_v52 }
 0x344   :  { %v1070_v36 = vpop.xlane.xlu0 %1069  ;;  %v1108_v26 = vmul.f32 %v1455_v20, %v1948_v59 }
 0x345   :  { %1464 = vrcp.f32 %v1070_v36  ;;  %v1068_v47 = vpop.xlane.xlu1 %1067  ;;  %1132 = vst [vmem:[%s2172_s11 + $0x48] sm:$0xff] %v1110_v35 }
 0x346   :  { %1466 = vrcp.f32 %v1068_v47  ;;  %1131 = vst [vmem:[%s2172_s11 + $0x40] sm:$0xff] %v1108_v26 }
 0x347   :  { %v1457_v0 = vpop.eup %1456 }
 0x348   :  { %v1459_v41 = vpop.eup %1458  ;;  %v1098_v43 = vmul.f32 %v1457_v0, %v2000_v14  ;;  %v1086_v44 = vpop.xlane.xlu0 %1085 }
 0x349   :  { %v1096_v52 = vmul.f32 %v1459_v41, %v2006_v53  ;;  %1468 = vrcp.f32 %v1086_v44  ;;  %v1084_v59 = vpop.xlane.xlu1 %1083 }
 0x34a   :  { %1126 = vst [vmem:[%s2172_s11 + $0x18] sm:$0xff] %v1098_v43  ;;  %1470 = vrcp.f32 %v1084_v59 }
 0x34b   :  { %v1461_v45 = vpop.eup %1460  ;;  %1125 = vst [vmem:[%s2172_s11 + $0x10] sm:$0xff] %v1096_v52 }
 0x34c   :  { %v1463_v40 = vpop.eup %1462  ;;  %v1114_v50 = vmul.f32 %v1461_v45, %v2016_v61  ;;  %v1074_v21 = vpop.xlane.xlu0 %1073 }
 0x34d   :  { %v1112_v14 = vmul.f32 %v1463_v40, %v2023_v42  ;;  %1472 = vrcp.f32 %v1074_v21  ;;  %v1072_v53 = vpop.xlane.xlu1 %1071 }
 0x34e   :  { %1134 = vst [vmem:[%s2172_s11 + $0x58] sm:$0xff] %v1114_v50  ;;  %1474 = vrcp.f32 %v1072_v53 }
 0x34f   :  { %v1465_v33 = vpop.eup %1464  ;;  %1133 = vst [vmem:[%s2172_s11 + $0x50] sm:$0xff] %v1112_v14 }
 0x350   :  { %v1467_v54 = vpop.eup %1466  ;;  %v1102_v56 = vmul.f32 %v1465_v33, %v2036_v46 }
 0x351   :  { %v1100_v61 = vmul.f32 %v1467_v54, %v2054_v58 }
 0x352   :  { %1128 = vst [vmem:[%s2172_s11 + $0x28] sm:$0xff] %v1102_v56 }
 0x353   :  { %v1469_v42 = vpop.eup %1468  ;;  %1127 = vst [vmem:[%s2172_s11 + $0x20] sm:$0xff] %v1100_v61 }
 0x354   :  { %v1471_v62 = vpop.eup %1470  ;;  %v1118_v39 = vmul.f32 %v1469_v42, %v2063_v1 }
 0x355   :  { %v1116_v57 = vmul.f32 %v1471_v62, %v2066_v3 }
 0x356   :  { %1136 = vst [vmem:[%s2172_s11 + $0x68] sm:$0xff] %v1118_v39  ;;  %v1090_v46 = vpop.xlane.xlu0 %1089 }
 0x357   :  { %v1473_v58 = vpop.eup %1472  ;;  %1135 = vst [vmem:[%s2172_s11 + $0x60] sm:$0xff] %v1116_v57  ;;  %1476 = vrcp.f32 %v1090_v46  ;;  %v1088_v60 = vpop.xlane.xlu1 %1087 }
 0x358   :  { %v1475_v2 = vpop.eup %1474  ;;  %v1106_v38 = vmul.f32 %v1473_v58, %v2070_v4  ;;  %1478 = vrcp.f32 %v1088_v60 }
 0x359   :  { %v1104_v63 = vmul.f32 %v1475_v2, %v2074_v28 }
 0x35a   :  { %1130 = vst [vmem:[%s2172_s11 + $0x38] sm:$0xff] %v1106_v38 }
 0x35b   :  { %1129 = vst [vmem:[%s2172_s11 + $0x30] sm:$0xff] %v1104_v63 }
 0x361   :  { %v1477_v1 = vpop.eup %1476 }
 0x362   :  { %v1122_v3 = vmul.f32 %v1477_v1, %v2091_v22  ;;  %v1479_v5 = vpop.eup %1478 }
 0x363   :  { %v1120_v4 = vmul.f32 %v1479_v5, %v2095_v24 }
 0x364   :  { %1138 = vst [vmem:[%s2172_s11 + $0x78] sm:$0xff] %v1122_v3 }
 0x365   :  { %1137 = vst [vmem:[%s2172_s11 + $0x70] sm:$0xff] %v1120_v4 }

</bundles_post_ra>
